<compile_context>
chip_gen: v7x
topology: tpu7x:2x2x1
jax: 0.10.0
libtpu: 0.0.40
codegen_flags: <defaults>
</compile_context>

<pallas_src>
import functools

import jax
import jax.numpy as jnp
from jax.experimental import pallas as pl
from jax.experimental.pallas import tpu as pltpu

D_MODEL = 32          # stands in for 768
N_HEADS = 2
HEAD_DIM = D_MODEL // N_HEADS
FFN_DIM = 64          # stands in for 3072
N_LAYERS = 2          # stands in for 12
VOCAB = 64
MAX_POS = 32
NUM_CLASSES = 3       # train_config.NUM_CLASSES (synthetic)
LSTM_HIDDEN = D_MODEL # LSTM hidden_size == input_size (768 == 768 in real model)
PAD_IDX = 1           # RoBERTa padding idx
LN_EPS = 1e-5

_VMEM_SPEC = pl.BlockSpec(memory_space=pltpu.MemorySpace.VMEM)


# --------------------------- in-kernel helpers -------------------------------

def _layernorm(x, g, b):
    mu = jnp.mean(x, axis=-1, keepdims=True)
    var = jnp.mean((x - mu) ** 2, axis=-1, keepdims=True)
    return (x - mu) * jax.lax.rsqrt(var + LN_EPS) * g + b


# --------------------------- Pallas kernels ----------------------------------

def _layernorm_kernel(x_ref, g_ref, b_ref, o_ref):
    o_ref[...] = _layernorm(x_ref[...], g_ref[...], b_ref[...])


def layernorm(x2d, g, b):
    M, D = x2d.shape
    return pl.pallas_call(
        _layernorm_kernel,
        out_shape=jax.ShapeDtypeStruct((M, D), jnp.float32),
        in_specs=[_VMEM_SPEC] * 3,
        out_specs=_VMEM_SPEC,
    )(x2d, g, b)


def _roberta_layer_kernel(x_ref, mask_ref, wqkv_ref, bqkv_ref, wo_ref, bo_ref,
                          ln1g_ref, ln1b_ref, w1_ref, b1_ref, w2_ref, b2_ref,
                          ln2g_ref, ln2b_ref, o_ref, *, n_heads, seq_len):
    """One fused RoBERTa encoder layer over the full (B*S, D) activation."""
    x = x_ref[...]                                   # (B*S, D)
    BS, D = x.shape
    B = BS // seq_len
    dh = D // n_heads
    scale = 1.0 / (dh ** 0.5)

    # Fused Q|K|V projection: one MXU pass, lane dim 3D.
    qkv = jnp.dot(x, wqkv_ref[...],
                  preferred_element_type=jnp.float32) + bqkv_ref[...]   # (B*S, 3D)

    mask = mask_ref[...]                             # (B, S) additive bias

    # Multi-head attention: static (batch, head) loop, all slices static,
    # no transposes / head-split relayouts outside the kernel.
    ctx_rows = []
    for b in range(B):
        r0 = b * seq_len
        mask_b = mask[b:b + 1, :]                    # (1, S)
        head_ctxs = []
        for h in range(n_heads):
            q = qkv[r0:r0 + seq_len, h * dh:(h + 1) * dh]                # (S, dh)
            k = qkv[r0:r0 + seq_len, D + h * dh:D + (h + 1) * dh]
            v = qkv[r0:r0 + seq_len, 2 * D + h * dh:2 * D + (h + 1) * dh]
            s = jax.lax.dot_general(q, k, (((1,), (1,)), ((), ())),
                                    preferred_element_type=jnp.float32) * scale
            s = s + mask_b                            # broadcast over query rows
            s = s - jnp.max(s, axis=-1, keepdims=True)
            p = jnp.exp(s)
            # EUP-approx reciprocal keeps the divide off the VPU slot.
            p = p * pl.reciprocal(jnp.sum(p, axis=-1, keepdims=True), approx=True)
            head_ctxs.append(jnp.dot(p, v, preferred_element_type=jnp.float32))
        ctx_rows.append(jnp.concatenate(head_ctxs, axis=1))              # (S, D)
    ctx = jnp.concatenate(ctx_rows, axis=0)                              # (B*S, D)

    attn_out = jnp.dot(ctx, wo_ref[...],
                       preferred_element_type=jnp.float32) + bo_ref[...]
    x = _layernorm(attn_out + x, ln1g_ref[...], ln1b_ref[...])

    h1 = jnp.dot(x, w1_ref[...],
                 preferred_element_type=jnp.float32) + b1_ref[...]
    # TODO(synk): HF RoBERTa uses exact erf-GELU; tanh approximation used here.
    h1 = jax.nn.gelu(h1, approximate=True)
    ffn = jnp.dot(h1, w2_ref[...],
                  preferred_element_type=jnp.float32) + b2_ref[...]
    o_ref[...] = _layernorm(ffn + x, ln2g_ref[...], ln2b_ref[...])


def roberta_layer(x2d, lp, mask_bias, *, seq_len):
    BS, D = x2d.shape
    return pl.pallas_call(
        functools.partial(_roberta_layer_kernel, n_heads=N_HEADS, seq_len=seq_len),
        out_shape=jax.ShapeDtypeStruct((BS, D), jnp.float32),
        in_specs=[_VMEM_SPEC] * 14,
        out_specs=_VMEM_SPEC,
    )(x2d, mask_bias, lp["wqkv"], lp["bqkv"], lp["wo"], lp["bo"],
      lp["ln1_g"], lp["ln1_b"], lp["w1"], lp["b1"], lp["w2"], lp["b2"],
      lp["ln2_g"], lp["ln2_b"])


def _bilstm_head_kernel(x_ref, wih_ref, b_ref, whh_ref, wc_ref, bc_ref, o_ref,
                        *, batch):
    """Fused BiLSTM (final hidden states) + classifier.

    x_ref   : (S*B, D) time-major flattened input (row t*B+b = timestep t, batch b)
    wih_ref : (D, 8H)  = [W_ih_fwd | W_ih_bwd], biases folded into b_ref (1, 8H)
    whh_ref : (2H, 8H) block-diagonal [[W_hh_fwd, 0], [0, W_hh_bwd]]
    wc_ref  : (2H, C), bc_ref: (1, C)       classifier
    o_ref   : (B, C)   logits
    """
    SB, D = x_ref.shape
    B = batch
    S = SB // B
    H = whh_ref.shape[0] // 2

    # Hoisted input projection: one matmul for every timestep and both
    # directions; only the (B,2H)@(2H,8H) recurrent matmul stays on the
    # serial critical path.
    gin = jnp.dot(x_ref[...], wih_ref[...],
                  preferred_element_type=jnp.float32) + b_ref[...]       # (S*B, 8H)
    whh = whh_ref[...]

    h = jnp.zeros((B, 2 * H), jnp.float32)   # [:, :H]=fwd, [:, H:]=bwd
    c = jnp.zeros((B, 2 * H), jnp.float32)

    for t in range(S):                       # static unroll (S is small & fixed)
        gx_f = gin[t * B:(t + 1) * B, 0:4 * H]                 # fwd gates @ x[t]
        gx_b = gin[(S - 1 - t) * B:(S - t) * B, 4 * H:8 * H]   # bwd gates @ x[S-1-t]
        g = (jnp.concatenate([gx_f, gx_b], axis=1)
             + jnp.dot(h, whh, preferred_element_type=jnp.float32))      # (B, 8H)

        def gsel(idx, _g=g):
            # gate `idx` (i,f,g,o) for both directions -> (B, 2H)
            return jnp.concatenate([_g[:, idx * H:(idx + 1) * H],
                                    _g[:, (4 + idx) * H:(5 + idx) * H]], axis=1)

        i_g = jax.nn.sigmoid(gsel(0))
        f_g = jax.nn.sigmoid(gsel(1))
        g_g = jnp.tanh(gsel(2))
        o_g = jax.nn.sigmoid(gsel(3))
        c = f_g * c + i_g * g_g
        h = o_g * jnp.tanh(c)

    # h == concat(h_fwd_final, h_bwd_final) == torch.cat((h[0], h[1]), dim=1)
    # Classifier fused into the epilogue (dropout is identity at inference).
    o_ref[...] = jnp.dot(h, wc_ref[...],
                         preferred_element_type=jnp.float32) + bc_ref[...]


def bilstm_classifier(x_tm, lstm_p, wc, bc, *, batch):
    return pl.pallas_call(
        functools.partial(_bilstm_head_kernel, batch=batch),
        out_shape=jax.ShapeDtypeStruct((batch, NUM_CLASSES), jnp.float32),
        in_specs=[_VMEM_SPEC] * 6,
        out_specs=_VMEM_SPEC,
    )(x_tm, lstm_p["wih"], lstm_p["b"], lstm_p["whh_bd"], wc, bc)


# --------------------------- model glue ---------------------------------------

def phobert_lstm_forward(params, input_ids, attn_mask):
    B, S = input_ids.shape

    # ---- RoBERTa embeddings (gathers are glue; LayerNorm in-kernel) ----
    token_mask = (input_ids != PAD_IDX).astype(jnp.int32)
    position_ids = jnp.cumsum(token_mask, axis=1) * token_mask + PAD_IDX
    emb = (jnp.take(params["word_emb"], input_ids, axis=0)
           + jnp.take(params["pos_emb"], position_ids, axis=0)
           + params["tok_emb"][0][None, None, :])
    x2d = layernorm(emb.reshape(B * S, D_MODEL),
                    params["emb_ln_g"], params["emb_ln_b"])

    mask_bias = (1.0 - attn_mask.astype(jnp.float32)) * -1e9     # (B, S)

    # ---- RoBERTa encoder -> last_hidden_state == bert(...)[0] ----
    for lp in params["layers"]:
        x2d = roberta_layer(x2d, lp, mask_bias, seq_len=S)

    # ---- BiLSTM final hidden states + classifier (one fused kernel) ----
    x_tm = x2d.reshape(B, S, D_MODEL).transpose(1, 0, 2).reshape(S * B, D_MODEL)
    logits = bilstm_classifier(x_tm, params["lstm"], params["wc"], params["bc"],
                               batch=B)
    return logits


# --------------------------- parameter init -----------------------------------

def init_params(seed=0):
    key = jax.random.PRNGKey(seed)
    counter = [0]

    def nk():
        counter[0] += 1
        return jax.random.fold_in(key, counter[0])

    def normal(shape, scale=0.02):
        return scale * jax.random.normal(nk(), shape, dtype=jnp.float32)

    D = D_MODEL
    params = {
        "word_emb": normal((VOCAB, D)),
        "pos_emb": normal((MAX_POS, D)),
        "tok_emb": normal((1, D)),
        "emb_ln_g": jnp.ones((1, D), jnp.float32),
        "emb_ln_b": jnp.zeros((1, D), jnp.float32),
        "layers": [],
    }
    for _ in range(N_LAYERS):
        wq, wk, wv = normal((D, D)), normal((D, D)), normal((D, D))
        params["layers"].append({
            # Fused Q|K|V projection weight/bias.
            "wqkv": jnp.concatenate([wq, wk, wv], axis=1),          # (D, 3D)
            "bqkv": jnp.zeros((1, 3 * D), jnp.float32),
            "wo": normal((D, D)), "bo": jnp.zeros((1, D), jnp.float32),
            "ln1_g": jnp.ones((1, D), jnp.float32),
            "ln1_b": jnp.zeros((1, D), jnp.float32),
            "w1": normal((D, FFN_DIM)), "b1": jnp.zeros((1, FFN_DIM), jnp.float32),
            "w2": normal((FFN_DIM, D)), "b2": jnp.zeros((1, D), jnp.float32),
            "ln2_g": jnp.ones((1, D), jnp.float32),
            "ln2_b": jnp.zeros((1, D), jnp.float32),
        })

    # ---- BiLSTM params, pre-packed for the fused kernel ----
    # PyTorch gate order i,f,g,o; weights stored pre-transposed (in, 4H);
    # b = b_ih + b_hh folded into one row per direction.
    H = LSTM_HIDDEN
    wih_f, whh_f = normal((D, 4 * H)), normal((H, 4 * H))
    wih_b, whh_b = normal((D, 4 * H)), normal((H, 4 * H))
    b_f = jnp.zeros((1, 4 * H), jnp.float32)
    b_b = jnp.zeros((1, 4 * H), jnp.float32)
    zeros_h = jnp.zeros((H, 4 * H), jnp.float32)
    params["lstm"] = {
        "wih": jnp.concatenate([wih_f, wih_b], axis=1),             # (D, 8H)
        "b": jnp.concatenate([b_f, b_b], axis=1),                   # (1, 8H)
        # Block-diagonal recurrent weight so both directions advance in a
        # single per-step matmul on the (B, 2H) stacked hidden state.
        "whh_bd": jnp.concatenate(
            [jnp.concatenate([whh_f, zeros_h], axis=1),
             jnp.concatenate([zeros_h, whh_b], axis=1)], axis=0),   # (2H, 8H)
    }
    params["wc"] = normal((2 * H, NUM_CLASSES))
    params["bc"] = jnp.zeros((1, NUM_CLASSES), jnp.float32)
    return params


if __name__ == "__main__":
    B, S = 2, 8
    params = init_params(0)
    key = jax.random.PRNGKey(0)
    input_ids = jax.random.randint(key, (B, S), 2, VOCAB, dtype=jnp.int32)
    attn_mask = jnp.ones((B, S), dtype=jnp.int32)

    logits = jax.jit(phobert_lstm_forward)(params, input_ids, attn_mask)
    logits = jax.block_until_ready(logits)
    assert logits.shape == (B, NUM_CLASSES)
    assert bool(jnp.all(jnp.isfinite(logits)))
    print("KERNEL_OK")
</pallas_src>

<mosaic_0001>
module attributes {stable_mosaic.version = 11 : i64} {
  func.func @_layernorm_kernel(%arg0: memref<16x32xf32, #tpu.memory_space<vmem>>, %arg1: memref<1x32xf32, #tpu.memory_space<vmem>>, %arg2: memref<1x32xf32, #tpu.memory_space<vmem>>, %arg3: memref<16x32xf32, #tpu.memory_space<vmem>>) attributes {dimension_semantics = [], scalar_prefetch = 0 : i64, scratch_operands = 0 : i64, tpu.core_type = #tpu.core_type<tc>} {
    %c0 = arith.constant 0 : index
    %c0_0 = arith.constant 0 : index
    %0 = vector.load %arg0[%c0, %c0_0] : memref<16x32xf32, #tpu.memory_space<vmem>>, vector<16x32xf32>
    %c0_1 = arith.constant 0 : index
    %c0_2 = arith.constant 0 : index
    %1 = vector.load %arg1[%c0_1, %c0_2] : memref<1x32xf32, #tpu.memory_space<vmem>>, vector<1x32xf32>
    %c0_3 = arith.constant 0 : index
    %c0_4 = arith.constant 0 : index
    %2 = vector.load %arg2[%c0_3, %c0_4] : memref<1x32xf32, #tpu.memory_space<vmem>>, vector<1x32xf32>
    %cst = arith.constant dense<0.000000e+00> : vector<16xf32>
    %3 = vector.multi_reduction <add>, %0, %cst [1] : vector<16x32xf32> to vector<16xf32>
    %4 = vector.shape_cast %3 : vector<16xf32> to vector<16x1xf32>
    %cst_5 = arith.constant 3.200000e+01 : f32
    %5 = vector.broadcast %cst_5 : f32 to vector<16x1xf32>
    %6 = arith.divf %4, %5 : vector<16x1xf32>
    %7 = vector.broadcast %6 : vector<16x1xf32> to vector<16x32xf32>
    %8 = arith.subf %0, %7 : vector<16x32xf32>
    %9 = arith.mulf %8, %8 : vector<16x32xf32>
    %cst_6 = arith.constant dense<0.000000e+00> : vector<16xf32>
    %10 = vector.multi_reduction <add>, %9, %cst_6 [1] : vector<16x32xf32> to vector<16xf32>
    %11 = vector.shape_cast %10 : vector<16xf32> to vector<16x1xf32>
    %cst_7 = arith.constant 3.200000e+01 : f32
    %12 = vector.broadcast %cst_7 : f32 to vector<16x1xf32>
    %13 = arith.divf %11, %12 : vector<16x1xf32>
    %14 = vector.broadcast %6 : vector<16x1xf32> to vector<16x32xf32>
    %15 = arith.subf %0, %14 : vector<16x32xf32>
    %cst_8 = arith.constant 9.99999974E-6 : f32
    %16 = vector.broadcast %cst_8 : f32 to vector<16x1xf32>
    %17 = arith.addf %13, %16 : vector<16x1xf32>
    %18 = math.rsqrt %17 : vector<16x1xf32>
    %19 = vector.broadcast %18 : vector<16x1xf32> to vector<16x32xf32>
    %20 = arith.mulf %15, %19 : vector<16x32xf32>
    %21 = vector.broadcast %1 : vector<1x32xf32> to vector<16x32xf32>
    %22 = arith.mulf %20, %21 : vector<16x32xf32>
    %23 = vector.broadcast %2 : vector<1x32xf32> to vector<16x32xf32>
    %24 = arith.addf %22, %23 : vector<16x32xf32>
    %c0_9 = arith.constant 0 : index
    %c0_10 = arith.constant 0 : index
    %25 = vector.load %arg3[%c0_9, %c0_10] : memref<16x32xf32, #tpu.memory_space<vmem>>, vector<16x32xf32>
    tpu.vector_store %arg3[%c0_9, %c0_10], %24 {strides = array<i32>} : memref<16x32xf32, #tpu.memory_space<vmem>>, vector<16x32xf32>,
    return
  }
}

module attributes {stable_mosaic.version = 11 : i64} {
  func.func @_roberta_layer_kernel(%arg0: memref<16x32xf32, #tpu.memory_space<vmem>>, %arg1: memref<2x8xf32, #tpu.memory_space<vmem>>, %arg2: memref<32x96xf32, #tpu.memory_space<vmem>>, %arg3: memref<1x96xf32, #tpu.memory_space<vmem>>, %arg4: memref<32x32xf32, #tpu.memory_space<vmem>>, %arg5: memref<1x32xf32, #tpu.memory_space<vmem>>, %arg6: memref<1x32xf32, #tpu.memory_space<vmem>>, %arg7: memref<1x32xf32, #tpu.memory_space<vmem>>, %arg8: memref<32x64xf32, #tpu.memory_space<vmem>>, %arg9: memref<1x64xf32, #tpu.memory_space<vmem>>, %arg10: memref<64x32xf32, #tpu.memory_space<vmem>>, %arg11: memref<1x32xf32, #tpu.memory_space<vmem>>, %arg12: memref<1x32xf32, #tpu.memory_space<vmem>>, %arg13: memref<1x32xf32, #tpu.memory_space<vmem>>, %arg14: memref<16x32xf32, #tpu.memory_space<vmem>>) attributes {dimension_semantics = [], scalar_prefetch = 0 : i64, scratch_operands = 0 : i64, tpu.core_type = #tpu.core_type<tc>} {
    %c0 = arith.constant 0 : index
    %c0_0 = arith.constant 0 : index
    %0 = vector.load %arg0[%c0, %c0_0] : memref<16x32xf32, #tpu.memory_space<vmem>>, vector<16x32xf32>
    %c0_1 = arith.constant 0 : index
    %c0_2 = arith.constant 0 : index
    %1 = vector.load %arg2[%c0_1, %c0_2] : memref<32x96xf32, #tpu.memory_space<vmem>>, vector<32x96xf32>
    %cst = arith.constant dense<0.000000e+00> : vector<16x96xf32>
    %2 = tpu.matmul %0, %1, %cst {dimension_numbers = #tpu.dot_dimension_numbers<[1], [0], [0], [1], [0, 0, 1, 1], [], []>} : vector<16x32xf32>, vector<32x96xf32>, vector<16x96xf32> -> vector<16x96xf32>
    %c0_3 = arith.constant 0 : index
    %c0_4 = arith.constant 0 : index
    %3 = vector.load %arg3[%c0_3, %c0_4] : memref<1x96xf32, #tpu.memory_space<vmem>>, vector<1x96xf32>
    %4 = vector.broadcast %3 : vector<1x96xf32> to vector<16x96xf32>
    %5 = arith.addf %2, %4 : vector<16x96xf32>
    %c0_5 = arith.constant 0 : index
    %c0_6 = arith.constant 0 : index
    %6 = vector.load %arg1[%c0_5, %c0_6] : memref<2x8xf32, #tpu.memory_space<vmem>>, vector<2x8xf32>
    %7 = vector.extract_strided_slice %6 {offsets = [0, 0], sizes = [1, 8], strides = [1, 1]} : vector<2x8xf32> to vector<1x8xf32>
    %8 = vector.extract_strided_slice %5 {offsets = [0, 0], sizes = [8, 16], strides = [1, 1]} : vector<16x96xf32> to vector<8x16xf32>
    %9 = vector.extract_strided_slice %5 {offsets = [0, 32], sizes = [8, 16], strides = [1, 1]} : vector<16x96xf32> to vector<8x16xf32>
    %10 = vector.extract_strided_slice %5 {offsets = [0, 64], sizes = [8, 16], strides = [1, 1]} : vector<16x96xf32> to vector<8x16xf32>
    %cst_7 = arith.constant dense<0.000000e+00> : vector<8x8xf32>
    %11 = tpu.matmul %8, %9, %cst_7 {dimension_numbers = #tpu.dot_dimension_numbers<[1], [1], [0], [0], [0, 0, 1, 0], [], []>} : vector<8x16xf32>, vector<8x16xf32>, vector<8x8xf32> -> vector<8x8xf32>
    %cst_8 = arith.constant 2.500000e-01 : f32
    %12 = vector.broadcast %cst_8 : f32 to vector<8x8xf32>
    %13 = arith.mulf %11, %12 : vector<8x8xf32>
    %14 = vector.broadcast %7 : vector<1x8xf32> to vector<8x8xf32>
    %15 = arith.addf %13, %14 : vector<8x8xf32>
    %cst_9 = arith.constant dense<0xFF800000> : vector<8xf32>
    %16 = vector.multi_reduction <maximumf>, %15, %cst_9 [1] : vector<8x8xf32> to vector<8xf32>
    %17 = vector.shape_cast %16 : vector<8xf32> to vector<8x1xf32>
    %18 = vector.broadcast %17 : vector<8x1xf32> to vector<8x8xf32>
    %19 = arith.subf %15, %18 : vector<8x8xf32>
    %20 = math.exp %19 : vector<8x8xf32>
    %cst_10 = arith.constant dense<0.000000e+00> : vector<8xf32>
    %21 = vector.multi_reduction <add>, %20, %cst_10 [1] : vector<8x8xf32> to vector<8xf32>
    %22 = vector.shape_cast %21 : vector<8xf32> to vector<8x1xf32>
    %23 = tpu.reciprocal %22 {approx = true} : vector<8x1xf32> -> vector<8x1xf32>
    %24 = vector.broadcast %23 : vector<8x1xf32> to vector<8x8xf32>
    %25 = arith.mulf %20, %24 : vector<8x8xf32>
    %cst_11 = arith.constant dense<0.000000e+00> : vector<8x16xf32>
    %26 = tpu.matmul %25, %10, %cst_11 {dimension_numbers = #tpu.dot_dimension_numbers<[1], [0], [0], [1], [0, 0, 1, 1], [], []>} : vector<8x8xf32>, vector<8x16xf32>, vector<8x16xf32> -> vector<8x16xf32>
    %27 = vector.extract_strided_slice %5 {offsets = [0, 16], sizes = [8, 16], strides = [1, 1]} : vector<16x96xf32> to vector<8x16xf32>
    %28 = vector.extract_strided_slice %5 {offsets = [0, 48], sizes = [8, 16], strides = [1, 1]} : vector<16x96xf32> to vector<8x16xf32>
    %29 = vector.extract_strided_slice %5 {offsets = [0, 80], sizes = [8, 16], strides = [1, 1]} : vector<16x96xf32> to vector<8x16xf32>
    %cst_12 = arith.constant dense<0.000000e+00> : vector<8x8xf32>
    %30 = tpu.matmul %27, %28, %cst_12 {dimension_numbers = #tpu.dot_dimension_numbers<[1], [1], [0], [0], [0, 0, 1, 0], [], []>} : vector<8x16xf32>, vector<8x16xf32>, vector<8x8xf32> -> vector<8x8xf32>
    %cst_13 = arith.constant 2.500000e-01 : f32
    %31 = vector.broadcast %cst_13 : f32 to vector<8x8xf32>
    %32 = arith.mulf %30, %31 : vector<8x8xf32>
    %33 = vector.broadcast %7 : vector<1x8xf32> to vector<8x8xf32>
    %34 = arith.addf %32, %33 : vector<8x8xf32>
    %cst_14 = arith.constant dense<0xFF800000> : vector<8xf32>
    %35 = vector.multi_reduction <maximumf>, %34, %cst_14 [1] : vector<8x8xf32> to vector<8xf32>
    %36 = vector.shape_cast %35 : vector<8xf32> to vector<8x1xf32>
    %37 = vector.broadcast %36 : vector<8x1xf32> to vector<8x8xf32>
    %38 = arith.subf %34, %37 : vector<8x8xf32>
    %39 = math.exp %38 : vector<8x8xf32>
    %cst_15 = arith.constant dense<0.000000e+00> : vector<8xf32>
    %40 = vector.multi_reduction <add>, %39, %cst_15 [1] : vector<8x8xf32> to vector<8xf32>
    %41 = vector.shape_cast %40 : vector<8xf32> to vector<8x1xf32>
    %42 = tpu.reciprocal %41 {approx = true} : vector<8x1xf32> -> vector<8x1xf32>
    %43 = vector.broadcast %42 : vector<8x1xf32> to vector<8x8xf32>
    %44 = arith.mulf %39, %43 : vector<8x8xf32>
    %cst_16 = arith.constant dense<0.000000e+00> : vector<8x16xf32>
    %45 = tpu.matmul %44, %29, %cst_16 {dimension_numbers = #tpu.dot_dimension_numbers<[1], [0], [0], [1], [0, 0, 1, 1], [], []>} : vector<8x8xf32>, vector<8x16xf32>, vector<8x16xf32> -> vector<8x16xf32>
    %46 = tpu.concatenate %26, %45 in 1 : vector<8x16xf32>, vector<8x16xf32> -> vector<8x32xf32>
    %47 = vector.extract_strided_slice %6 {offsets = [1, 0], sizes = [1, 8], strides = [1, 1]} : vector<2x8xf32> to vector<1x8xf32>
    %48 = vector.extract_strided_slice %5 {offsets = [8, 0], sizes = [8, 16], strides = [1, 1]} : vector<16x96xf32> to vector<8x16xf32>
    %49 = vector.extract_strided_slice %5 {offsets = [8, 32], sizes = [8, 16], strides = [1, 1]} : vector<16x96xf32> to vector<8x16xf32>
    %50 = vector.extract_strided_slice %5 {offsets = [8, 64], sizes = [8, 16], strides = [1, 1]} : vector<16x96xf32> to vector<8x16xf32>
    %cst_17 = arith.constant dense<0.000000e+00> : vector<8x8xf32>
    %51 = tpu.matmul %48, %49, %cst_17 {dimension_numbers = #tpu.dot_dimension_numbers<[1], [1], [0], [0], [0, 0, 1, 0], [], []>} : vector<8x16xf32>, vector<8x16xf32>, vector<8x8xf32> -> vector<8x8xf32>
    %cst_18 = arith.constant 2.500000e-01 : f32
    %52 = vector.broadcast %cst_18 : f32 to vector<8x8xf32>
    %53 = arith.mulf %51, %52 : vector<8x8xf32>
    %54 = vector.broadcast %47 : vector<1x8xf32> to vector<8x8xf32>
    %55 = arith.addf %53, %54 : vector<8x8xf32>
    %cst_19 = arith.constant dense<0xFF800000> : vector<8xf32>
    %56 = vector.multi_reduction <maximumf>, %55, %cst_19 [1] : vector<8x8xf32> to vector<8xf32>
    %57 = vector.shape_cast %56 : vector<8xf32> to vector<8x1xf32>
    %58 = vector.broadcast %57 : vector<8x1xf32> to vector<8x8xf32>
    %59 = arith.subf %55, %58 : vector<8x8xf32>
    %60 = math.exp %59 : vector<8x8xf32>
    %cst_20 = arith.constant dense<0.000000e+00> : vector<8xf32>
    %61 = vector.multi_reduction <add>, %60, %cst_20 [1] : vector<8x8xf32> to vector<8xf32>
    %62 = vector.shape_cast %61 : vector<8xf32> to vector<8x1xf32>
    %63 = tpu.reciprocal %62 {approx = true} : vector<8x1xf32> -> vector<8x1xf32>
    %64 = vector.broadcast %63 : vector<8x1xf32> to vector<8x8xf32>
    %65 = arith.mulf %60, %64 : vector<8x8xf32>
    %cst_21 = arith.constant dense<0.000000e+00> : vector<8x16xf32>
    %66 = tpu.matmul %65, %50, %cst_21 {dimension_numbers = #tpu.dot_dimension_numbers<[1], [0], [0], [1], [0, 0, 1, 1], [], []>} : vector<8x8xf32>, vector<8x16xf32>, vector<8x16xf32> -> vector<8x16xf32>
    %67 = vector.extract_strided_slice %5 {offsets = [8, 16], sizes = [8, 16], strides = [1, 1]} : vector<16x96xf32> to vector<8x16xf32>
    %68 = vector.extract_strided_slice %5 {offsets = [8, 48], sizes = [8, 16], strides = [1, 1]} : vector<16x96xf32> to vector<8x16xf32>
    %69 = vector.extract_strided_slice %5 {offsets = [8, 80], sizes = [8, 16], strides = [1, 1]} : vector<16x96xf32> to vector<8x16xf32>
    %cst_22 = arith.constant dense<0.000000e+00> : vector<8x8xf32>
    %70 = tpu.matmul %67, %68, %cst_22 {dimension_numbers = #tpu.dot_dimension_numbers<[1], [1], [0], [0], [0, 0, 1, 0], [], []>} : vector<8x16xf32>, vector<8x16xf32>, vector<8x8xf32> -> vector<8x8xf32>
    %cst_23 = arith.constant 2.500000e-01 : f32
    %71 = vector.broadcast %cst_23 : f32 to vector<8x8xf32>
    %72 = arith.mulf %70, %71 : vector<8x8xf32>
    %73 = vector.broadcast %47 : vector<1x8xf32> to vector<8x8xf32>
    %74 = arith.addf %72, %73 : vector<8x8xf32>
    %cst_24 = arith.constant dense<0xFF800000> : vector<8xf32>
    %75 = vector.multi_reduction <maximumf>, %74, %cst_24 [1] : vector<8x8xf32> to vector<8xf32>
    %76 = vector.shape_cast %75 : vector<8xf32> to vector<8x1xf32>
    %77 = vector.broadcast %76 : vector<8x1xf32> to vector<8x8xf32>
    %78 = arith.subf %74, %77 : vector<8x8xf32>
    %79 = math.exp %78 : vector<8x8xf32>
    %cst_25 = arith.constant dense<0.000000e+00> : vector<8xf32>
    %80 = vector.multi_reduction <add>, %79, %cst_25 [1] : vector<8x8xf32> to vector<8xf32>
    %81 = vector.shape_cast %80 : vector<8xf32> to vector<8x1xf32>
    %82 = tpu.reciprocal %81 {approx = true} : vector<8x1xf32> -> vector<8x1xf32>
    %83 = vector.broadcast %82 : vector<8x1xf32> to vector<8x8xf32>
    %84 = arith.mulf %79, %83 : vector<8x8xf32>
    %cst_26 = arith.constant dense<0.000000e+00> : vector<8x16xf32>
    %85 = tpu.matmul %84, %69, %cst_26 {dimension_numbers = #tpu.dot_dimension_numbers<[1], [0], [0], [1], [0, 0, 1, 1], [], []>} : vector<8x8xf32>, vector<8x16xf32>, vector<8x16xf32> -> vector<8x16xf32>
    %86 = tpu.concatenate %66, %85 in 1 : vector<8x16xf32>, vector<8x16xf32> -> vector<8x32xf32>
    %87 = tpu.concatenate %46, %86 in 0 : vector<8x32xf32>, vector<8x32xf32> -> vector<16x32xf32>
    %c0_27 = arith.constant 0 : index
    %c0_28 = arith.constant 0 : index
    %88 = vector.load %arg4[%c0_27, %c0_28] : memref<32x32xf32, #tpu.memory_space<vmem>>, vector<32x32xf32>
    %cst_29 = arith.constant dense<0.000000e+00> : vector<16x32xf32>
    %89 = tpu.matmul %87, %88, %cst_29 {dimension_numbers = #tpu.dot_dimension_numbers<[1], [0], [0], [1], [0, 0, 1, 1], [], []>} : vector<16x32xf32>, vector<32x32xf32>, vector<16x32xf32> -> vector<16x32xf32>
    %c0_30 = arith.constant 0 : index
    %c0_31 = arith.constant 0 : index
    %90 = vector.load %arg5[%c0_30, %c0_31] : memref<1x32xf32, #tpu.memory_space<vmem>>, vector<1x32xf32>
    %91 = vector.broadcast %90 : vector<1x32xf32> to vector<16x32xf32>
    %92 = arith.addf %89, %91 : vector<16x32xf32>
    %93 = arith.addf %92, %0 : vector<16x32xf32>
    %c0_32 = arith.constant 0 : index
    %c0_33 = arith.constant 0 : index
    %94 = vector.load %arg6[%c0_32, %c0_33] : memref<1x32xf32, #tpu.memory_space<vmem>>, vector<1x32xf32>
    %c0_34 = arith.constant 0 : index
    %c0_35 = arith.constant 0 : index
    %95 = vector.load %arg7[%c0_34, %c0_35] : memref<1x32xf32, #tpu.memory_space<vmem>>, vector<1x32xf32>
    %cst_36 = arith.constant dense<0.000000e+00> : vector<16xf32>
    %96 = vector.multi_reduction <add>, %93, %cst_36 [1] : vector<16x32xf32> to vector<16xf32>
    %97 = vector.shape_cast %96 : vector<16xf32> to vector<16x1xf32>
    %cst_37 = arith.constant 3.200000e+01 : f32
    %98 = vector.broadcast %cst_37 : f32 to vector<16x1xf32>
    %99 = arith.divf %97, %98 : vector<16x1xf32>
    %100 = vector.broadcast %99 : vector<16x1xf32> to vector<16x32xf32>
    %101 = arith.subf %93, %100 : vector<16x32xf32>
    %102 = arith.mulf %101, %101 : vector<16x32xf32>
    %cst_38 = arith.constant dense<0.000000e+00> : vector<16xf32>
    %103 = vector.multi_reduction <add>, %102, %cst_38 [1] : vector<16x32xf32> to vector<16xf32>
    %104 = vector.shape_cast %103 : vector<16xf32> to vector<16x1xf32>
    %cst_39 = arith.constant 3.200000e+01 : f32
    %105 = vector.broadcast %cst_39 : f32 to vector<16x1xf32>
    %106 = arith.divf %104, %105 : vector<16x1xf32>
    %107 = vector.broadcast %99 : vector<16x1xf32> to vector<16x32xf32>
    %108 = arith.subf %93, %107 : vector<16x32xf32>
    %cst_40 = arith.constant 9.99999974E-6 : f32
    %109 = vector.broadcast %cst_40 : f32 to vector<16x1xf32>
    %110 = arith.addf %106, %109 : vector<16x1xf32>
    %111 = math.rsqrt %110 : vector<16x1xf32>
    %112 = vector.broadcast %111 : vector<16x1xf32> to vector<16x32xf32>
    %113 = arith.mulf %108, %112 : vector<16x32xf32>
    %114 = vector.broadcast %94 : vector<1x32xf32> to vector<16x32xf32>
    %115 = arith.mulf %113, %114 : vector<16x32xf32>
    %116 = vector.broadcast %95 : vector<1x32xf32> to vector<16x32xf32>
    %117 = arith.addf %115, %116 : vector<16x32xf32>
    %c0_41 = arith.constant 0 : index
    %c0_42 = arith.constant 0 : index
    %118 = vector.load %arg8[%c0_41, %c0_42] : memref<32x64xf32, #tpu.memory_space<vmem>>, vector<32x64xf32>
    %cst_43 = arith.constant dense<0.000000e+00> : vector<16x64xf32>
    %119 = tpu.matmul %117, %118, %cst_43 {dimension_numbers = #tpu.dot_dimension_numbers<[1], [0], [0], [1], [0, 0, 1, 1], [], []>} : vector<16x32xf32>, vector<32x64xf32>, vector<16x64xf32> -> vector<16x64xf32>
    %c0_44 = arith.constant 0 : index
    %c0_45 = arith.constant 0 : index
    %120 = vector.load %arg9[%c0_44, %c0_45] : memref<1x64xf32, #tpu.memory_space<vmem>>, vector<1x64xf32>
    %121 = vector.broadcast %120 : vector<1x64xf32> to vector<16x64xf32>
    %122 = arith.addf %119, %121 : vector<16x64xf32>
    %123 = arith.mulf %122, %122 : vector<16x64xf32>
    %124 = arith.mulf %122, %123 : vector<16x64xf32>
    %cst_46 = arith.constant 4.471500e-02 : f32
    %125 = vector.broadcast %cst_46 : f32 to vector<16x64xf32>
    %126 = arith.mulf %125, %124 : vector<16x64xf32>
    %127 = arith.addf %122, %126 : vector<16x64xf32>
    %cst_47 = arith.constant 0.797884583 : f32
    %128 = vector.broadcast %cst_47 : f32 to vector<16x64xf32>
    %129 = arith.mulf %128, %127 : vector<16x64xf32>
    %130 = math.tanh %129 : vector<16x64xf32>
    %cst_48 = arith.constant 1.000000e+00 : f32
    %131 = vector.broadcast %cst_48 : f32 to vector<16x64xf32>
    %132 = arith.addf %131, %130 : vector<16x64xf32>
    %cst_49 = arith.constant 5.000000e-01 : f32
    %133 = vector.broadcast %cst_49 : f32 to vector<16x64xf32>
    %134 = arith.mulf %133, %132 : vector<16x64xf32>
    %135 = arith.mulf %122, %134 : vector<16x64xf32>
    %c0_50 = arith.constant 0 : index
    %c0_51 = arith.constant 0 : index
    %136 = vector.load %arg10[%c0_50, %c0_51] : memref<64x32xf32, #tpu.memory_space<vmem>>, vector<64x32xf32>
    %cst_52 = arith.constant dense<0.000000e+00> : vector<16x32xf32>
    %137 = tpu.matmul %135, %136, %cst_52 {dimension_numbers = #tpu.dot_dimension_numbers<[1], [0], [0], [1], [0, 0, 1, 1], [], []>} : vector<16x64xf32>, vector<64x32xf32>, vector<16x32xf32> -> vector<16x32xf32>
    %c0_53 = arith.constant 0 : index
    %c0_54 = arith.constant 0 : index
    %138 = vector.load %arg11[%c0_53, %c0_54] : memref<1x32xf32, #tpu.memory_space<vmem>>, vector<1x32xf32>
    %139 = vector.broadcast %138 : vector<1x32xf32> to vector<16x32xf32>
    %140 = arith.addf %137, %139 : vector<16x32xf32>
    %141 = arith.addf %140, %117 : vector<16x32xf32>
    %c0_55 = arith.constant 0 : index
    %c0_56 = arith.constant 0 : index
    %142 = vector.load %arg12[%c0_55, %c0_56] : memref<1x32xf32, #tpu.memory_space<vmem>>, vector<1x32xf32>
    %c0_57 = arith.constant 0 : index
    %c0_58 = arith.constant 0 : index
    %143 = vector.load %arg13[%c0_57, %c0_58] : memref<1x32xf32, #tpu.memory_space<vmem>>, vector<1x32xf32>
    %cst_59 = arith.constant dense<0.000000e+00> : vector<16xf32>
    %144 = vector.multi_reduction <add>, %141, %cst_59 [1] : vector<16x32xf32> to vector<16xf32>
    %145 = vector.shape_cast %144 : vector<16xf32> to vector<16x1xf32>
    %cst_60 = arith.constant 3.200000e+01 : f32
    %146 = vector.broadcast %cst_60 : f32 to vector<16x1xf32>
    %147 = arith.divf %145, %146 : vector<16x1xf32>
    %148 = vector.broadcast %147 : vector<16x1xf32> to vector<16x32xf32>
    %149 = arith.subf %141, %148 : vector<16x32xf32>
    %150 = arith.mulf %149, %149 : vector<16x32xf32>
    %cst_61 = arith.constant dense<0.000000e+00> : vector<16xf32>
    %151 = vector.multi_reduction <add>, %150, %cst_61 [1] : vector<16x32xf32> to vector<16xf32>
    %152 = vector.shape_cast %151 : vector<16xf32> to vector<16x1xf32>
    %cst_62 = arith.constant 3.200000e+01 : f32
    %153 = vector.broadcast %cst_62 : f32 to vector<16x1xf32>
    %154 = arith.divf %152, %153 : vector<16x1xf32>
    %155 = vector.broadcast %147 : vector<16x1xf32> to vector<16x32xf32>
    %156 = arith.subf %141, %155 : vector<16x32xf32>
    %cst_63 = arith.constant 9.99999974E-6 : f32
    %157 = vector.broadcast %cst_63 : f32 to vector<16x1xf32>
    %158 = arith.addf %154, %157 : vector<16x1xf32>
    %159 = math.rsqrt %158 : vector<16x1xf32>
    %160 = vector.broadcast %159 : vector<16x1xf32> to vector<16x32xf32>
    %161 = arith.mulf %156, %160 : vector<16x32xf32>
    %162 = vector.broadcast %142 : vector<1x32xf32> to vector<16x32xf32>
    %163 = arith.mulf %161, %162 : vector<16x32xf32>
    %164 = vector.broadcast %143 : vector<1x32xf32> to vector<16x32xf32>
    %165 = arith.addf %163, %164 : vector<16x32xf32>
    %c0_64 = arith.constant 0 : index
    %c0_65 = arith.constant 0 : index
    %166 = vector.load %arg14[%c0_64, %c0_65] : memref<16x32xf32, #tpu.memory_space<vmem>>, vector<16x32xf32>
    tpu.vector_store %arg14[%c0_64, %c0_65], %165 {strides = array<i32>} : memref<16x32xf32, #tpu.memory_space<vmem>>, vector<16x32xf32>,
    return
  }
}

module attributes {stable_mosaic.version = 11 : i64} {
  func.func @_bilstm_head_kernel(%arg0: memref<16x32xf32, #tpu.memory_space<vmem>>, %arg1: memref<32x256xf32, #tpu.memory_space<vmem>>, %arg2: memref<1x256xf32, #tpu.memory_space<vmem>>, %arg3: memref<64x256xf32, #tpu.memory_space<vmem>>, %arg4: memref<64x3xf32, #tpu.memory_space<vmem>>, %arg5: memref<1x3xf32, #tpu.memory_space<vmem>>, %arg6: memref<2x3xf32, #tpu.memory_space<vmem>>) attributes {dimension_semantics = [], scalar_prefetch = 0 : i64, scratch_operands = 0 : i64, tpu.core_type = #tpu.core_type<tc>} {
    %c0 = arith.constant 0 : index
    %c0_0 = arith.constant 0 : index
    %0 = vector.load %arg0[%c0, %c0_0] : memref<16x32xf32, #tpu.memory_space<vmem>>, vector<16x32xf32>
    %c0_1 = arith.constant 0 : index
    %c0_2 = arith.constant 0 : index
    %1 = vector.load %arg1[%c0_1, %c0_2] : memref<32x256xf32, #tpu.memory_space<vmem>>, vector<32x256xf32>
    %cst = arith.constant dense<0.000000e+00> : vector<16x256xf32>
    %2 = tpu.matmul %0, %1, %cst {dimension_numbers = #tpu.dot_dimension_numbers<[1], [0], [0], [1], [0, 0, 1, 1], [], []>} : vector<16x32xf32>, vector<32x256xf32>, vector<16x256xf32> -> vector<16x256xf32>
    %c0_3 = arith.constant 0 : index
    %c0_4 = arith.constant 0 : index
    %3 = vector.load %arg2[%c0_3, %c0_4] : memref<1x256xf32, #tpu.memory_space<vmem>>, vector<1x256xf32>
    %4 = vector.broadcast %3 : vector<1x256xf32> to vector<16x256xf32>
    %5 = arith.addf %2, %4 : vector<16x256xf32>
    %c0_5 = arith.constant 0 : index
    %c0_6 = arith.constant 0 : index
    %6 = vector.load %arg3[%c0_5, %c0_6] : memref<64x256xf32, #tpu.memory_space<vmem>>, vector<64x256xf32>
    %cst_7 = arith.constant 0.000000e+00 : f32
    %7 = vector.broadcast %cst_7 : f32 to vector<2x64xf32>
    %cst_8 = arith.constant 0.000000e+00 : f32
    %8 = vector.broadcast %cst_8 : f32 to vector<2x64xf32>
    %9 = vector.extract_strided_slice %5 {offsets = [0, 0], sizes = [2, 128], strides = [1, 1]} : vector<16x256xf32> to vector<2x128xf32>
    %10 = vector.extract_strided_slice %5 {offsets = [14, 128], sizes = [2, 128], strides = [1, 1]} : vector<16x256xf32> to vector<2x128xf32>
    %11 = tpu.concatenate %9, %10 in 1 : vector<2x128xf32>, vector<2x128xf32> -> vector<2x256xf32>
    %cst_9 = arith.constant dense<0.000000e+00> : vector<2x256xf32>
    %12 = tpu.matmul %7, %6, %cst_9 {dimension_numbers = #tpu.dot_dimension_numbers<[1], [0], [0], [1], [0, 0, 1, 1], [], []>} : vector<2x64xf32>, vector<64x256xf32>, vector<2x256xf32> -> vector<2x256xf32>
    %13 = arith.addf %11, %12 : vector<2x256xf32>
    %14 = vector.extract_strided_slice %13 {offsets = [0, 0], sizes = [2, 32], strides = [1, 1]} : vector<2x256xf32> to vector<2x32xf32>
    %15 = vector.extract_strided_slice %13 {offsets = [0, 128], sizes = [2, 32], strides = [1, 1]} : vector<2x256xf32> to vector<2x32xf32>
    %16 = tpu.concatenate %14, %15 in 1 : vector<2x32xf32>, vector<2x32xf32> -> vector<2x64xf32>
    %17 = arith.negf %16 : vector<2x64xf32>
    %18 = math.exp %17 : vector<2x64xf32>
    %cst_10 = arith.constant 1.000000e+00 : f32
    %19 = vector.broadcast %cst_10 : f32 to vector<2x64xf32>
    %20 = arith.addf %19, %18 : vector<2x64xf32>
    %21 = arith.divf %19, %20 : vector<2x64xf32>
    %22 = vector.extract_strided_slice %13 {offsets = [0, 32], sizes = [2, 32], strides = [1, 1]} : vector<2x256xf32> to vector<2x32xf32>
    %23 = vector.extract_strided_slice %13 {offsets = [0, 160], sizes = [2, 32], strides = [1, 1]} : vector<2x256xf32> to vector<2x32xf32>
    %24 = tpu.concatenate %22, %23 in 1 : vector<2x32xf32>, vector<2x32xf32> -> vector<2x64xf32>
    %25 = arith.negf %24 : vector<2x64xf32>
    %26 = math.exp %25 : vector<2x64xf32>
    %cst_11 = arith.constant 1.000000e+00 : f32
    %27 = vector.broadcast %cst_11 : f32 to vector<2x64xf32>
    %28 = arith.addf %27, %26 : vector<2x64xf32>
    %29 = arith.divf %27, %28 : vector<2x64xf32>
    %30 = vector.extract_strided_slice %13 {offsets = [0, 64], sizes = [2, 32], strides = [1, 1]} : vector<2x256xf32> to vector<2x32xf32>
    %31 = vector.extract_strided_slice %13 {offsets = [0, 192], sizes = [2, 32], strides = [1, 1]} : vector<2x256xf32> to vector<2x32xf32>
    %32 = tpu.concatenate %30, %31 in 1 : vector<2x32xf32>, vector<2x32xf32> -> vector<2x64xf32>
    %33 = math.tanh %32 : vector<2x64xf32>
    %34 = vector.extract_strided_slice %13 {offsets = [0, 96], sizes = [2, 32], strides = [1, 1]} : vector<2x256xf32> to vector<2x32xf32>
    %35 = vector.extract_strided_slice %13 {offsets = [0, 224], sizes = [2, 32], strides = [1, 1]} : vector<2x256xf32> to vector<2x32xf32>
    %36 = tpu.concatenate %34, %35 in 1 : vector<2x32xf32>, vector<2x32xf32> -> vector<2x64xf32>
    %37 = arith.negf %36 : vector<2x64xf32>
    %38 = math.exp %37 : vector<2x64xf32>
    %cst_12 = arith.constant 1.000000e+00 : f32
    %39 = vector.broadcast %cst_12 : f32 to vector<2x64xf32>
    %40 = arith.addf %39, %38 : vector<2x64xf32>
    %41 = arith.divf %39, %40 : vector<2x64xf32>
    %42 = arith.mulf %29, %8 : vector<2x64xf32>
    %43 = arith.mulf %21, %33 : vector<2x64xf32>
    %44 = arith.addf %42, %43 : vector<2x64xf32>
    %45 = math.tanh %44 : vector<2x64xf32>
    %46 = arith.mulf %41, %45 : vector<2x64xf32>
    %47 = vector.extract_strided_slice %5 {offsets = [2, 0], sizes = [2, 128], strides = [1, 1]} : vector<16x256xf32> to vector<2x128xf32>
    %48 = vector.extract_strided_slice %5 {offsets = [12, 128], sizes = [2, 128], strides = [1, 1]} : vector<16x256xf32> to vector<2x128xf32>
    %49 = tpu.concatenate %47, %48 in 1 : vector<2x128xf32>, vector<2x128xf32> -> vector<2x256xf32>
    %cst_13 = arith.constant dense<0.000000e+00> : vector<2x256xf32>
    %50 = tpu.matmul %46, %6, %cst_13 {dimension_numbers = #tpu.dot_dimension_numbers<[1], [0], [0], [1], [0, 0, 1, 1], [], []>} : vector<2x64xf32>, vector<64x256xf32>, vector<2x256xf32> -> vector<2x256xf32>
    %51 = arith.addf %49, %50 : vector<2x256xf32>
    %52 = vector.extract_strided_slice %51 {offsets = [0, 0], sizes = [2, 32], strides = [1, 1]} : vector<2x256xf32> to vector<2x32xf32>
    %53 = vector.extract_strided_slice %51 {offsets = [0, 128], sizes = [2, 32], strides = [1, 1]} : vector<2x256xf32> to vector<2x32xf32>
    %54 = tpu.concatenate %52, %53 in 1 : vector<2x32xf32>, vector<2x32xf32> -> vector<2x64xf32>
    %55 = arith.negf %54 : vector<2x64xf32>
    %56 = math.exp %55 : vector<2x64xf32>
    %cst_14 = arith.constant 1.000000e+00 : f32
    %57 = vector.broadcast %cst_14 : f32 to vector<2x64xf32>
    %58 = arith.addf %57, %56 : vector<2x64xf32>
    %59 = arith.divf %57, %58 : vector<2x64xf32>
    %60 = vector.extract_strided_slice %51 {offsets = [0, 32], sizes = [2, 32], strides = [1, 1]} : vector<2x256xf32> to vector<2x32xf32>
    %61 = vector.extract_strided_slice %51 {offsets = [0, 160], sizes = [2, 32], strides = [1, 1]} : vector<2x256xf32> to vector<2x32xf32>
    %62 = tpu.concatenate %60, %61 in 1 : vector<2x32xf32>, vector<2x32xf32> -> vector<2x64xf32>
    %63 = arith.negf %62 : vector<2x64xf32>
    %64 = math.exp %63 : vector<2x64xf32>
    %cst_15 = arith.constant 1.000000e+00 : f32
    %65 = vector.broadcast %cst_15 : f32 to vector<2x64xf32>
    %66 = arith.addf %65, %64 : vector<2x64xf32>
    %67 = arith.divf %65, %66 : vector<2x64xf32>
    %68 = vector.extract_strided_slice %51 {offsets = [0, 64], sizes = [2, 32], strides = [1, 1]} : vector<2x256xf32> to vector<2x32xf32>
    %69 = vector.extract_strided_slice %51 {offsets = [0, 192], sizes = [2, 32], strides = [1, 1]} : vector<2x256xf32> to vector<2x32xf32>
    %70 = tpu.concatenate %68, %69 in 1 : vector<2x32xf32>, vector<2x32xf32> -> vector<2x64xf32>
    %71 = math.tanh %70 : vector<2x64xf32>
    %72 = vector.extract_strided_slice %51 {offsets = [0, 96], sizes = [2, 32], strides = [1, 1]} : vector<2x256xf32> to vector<2x32xf32>
    %73 = vector.extract_strided_slice %51 {offsets = [0, 224], sizes = [2, 32], strides = [1, 1]} : vector<2x256xf32> to vector<2x32xf32>
    %74 = tpu.concatenate %72, %73 in 1 : vector<2x32xf32>, vector<2x32xf32> -> vector<2x64xf32>
    %75 = arith.negf %74 : vector<2x64xf32>
    %76 = math.exp %75 : vector<2x64xf32>
    %cst_16 = arith.constant 1.000000e+00 : f32
    %77 = vector.broadcast %cst_16 : f32 to vector<2x64xf32>
    %78 = arith.addf %77, %76 : vector<2x64xf32>
    %79 = arith.divf %77, %78 : vector<2x64xf32>
    %80 = arith.mulf %67, %44 : vector<2x64xf32>
    %81 = arith.mulf %59, %71 : vector<2x64xf32>
    %82 = arith.addf %80, %81 : vector<2x64xf32>
    %83 = math.tanh %82 : vector<2x64xf32>
    %84 = arith.mulf %79, %83 : vector<2x64xf32>
    %85 = vector.extract_strided_slice %5 {offsets = [4, 0], sizes = [2, 128], strides = [1, 1]} : vector<16x256xf32> to vector<2x128xf32>
    %86 = vector.extract_strided_slice %5 {offsets = [10, 128], sizes = [2, 128], strides = [1, 1]} : vector<16x256xf32> to vector<2x128xf32>
    %87 = tpu.concatenate %85, %86 in 1 : vector<2x128xf32>, vector<2x128xf32> -> vector<2x256xf32>
    %cst_17 = arith.constant dense<0.000000e+00> : vector<2x256xf32>
    %88 = tpu.matmul %84, %6, %cst_17 {dimension_numbers = #tpu.dot_dimension_numbers<[1], [0], [0], [1], [0, 0, 1, 1], [], []>} : vector<2x64xf32>, vector<64x256xf32>, vector<2x256xf32> -> vector<2x256xf32>
    %89 = arith.addf %87, %88 : vector<2x256xf32>
    %90 = vector.extract_strided_slice %89 {offsets = [0, 0], sizes = [2, 32], strides = [1, 1]} : vector<2x256xf32> to vector<2x32xf32>
    %91 = vector.extract_strided_slice %89 {offsets = [0, 128], sizes = [2, 32], strides = [1, 1]} : vector<2x256xf32> to vector<2x32xf32>
    %92 = tpu.concatenate %90, %91 in 1 : vector<2x32xf32>, vector<2x32xf32> -> vector<2x64xf32>
    %93 = arith.negf %92 : vector<2x64xf32>
    %94 = math.exp %93 : vector<2x64xf32>
    %cst_18 = arith.constant 1.000000e+00 : f32
    %95 = vector.broadcast %cst_18 : f32 to vector<2x64xf32>
    %96 = arith.addf %95, %94 : vector<2x64xf32>
    %97 = arith.divf %95, %96 : vector<2x64xf32>
    %98 = vector.extract_strided_slice %89 {offsets = [0, 32], sizes = [2, 32], strides = [1, 1]} : vector<2x256xf32> to vector<2x32xf32>
    %99 = vector.extract_strided_slice %89 {offsets = [0, 160], sizes = [2, 32], strides = [1, 1]} : vector<2x256xf32> to vector<2x32xf32>
    %100 = tpu.concatenate %98, %99 in 1 : vector<2x32xf32>, vector<2x32xf32> -> vector<2x64xf32>
    %101 = arith.negf %100 : vector<2x64xf32>
    %102 = math.exp %101 : vector<2x64xf32>
    %cst_19 = arith.constant 1.000000e+00 : f32
    %103 = vector.broadcast %cst_19 : f32 to vector<2x64xf32>
    %104 = arith.addf %103, %102 : vector<2x64xf32>
    %105 = arith.divf %103, %104 : vector<2x64xf32>
    %106 = vector.extract_strided_slice %89 {offsets = [0, 64], sizes = [2, 32], strides = [1, 1]} : vector<2x256xf32> to vector<2x32xf32>
    %107 = vector.extract_strided_slice %89 {offsets = [0, 192], sizes = [2, 32], strides = [1, 1]} : vector<2x256xf32> to vector<2x32xf32>
    %108 = tpu.concatenate %106, %107 in 1 : vector<2x32xf32>, vector<2x32xf32> -> vector<2x64xf32>
    %109 = math.tanh %108 : vector<2x64xf32>
    %110 = vector.extract_strided_slice %89 {offsets = [0, 96], sizes = [2, 32], strides = [1, 1]} : vector<2x256xf32> to vector<2x32xf32>
    %111 = vector.extract_strided_slice %89 {offsets = [0, 224], sizes = [2, 32], strides = [1, 1]} : vector<2x256xf32> to vector<2x32xf32>
    %112 = tpu.concatenate %110, %111 in 1 : vector<2x32xf32>, vector<2x32xf32> -> vector<2x64xf32>
    %113 = arith.negf %112 : vector<2x64xf32>
    %114 = math.exp %113 : vector<2x64xf32>
    %cst_20 = arith.constant 1.000000e+00 : f32
    %115 = vector.broadcast %cst_20 : f32 to vector<2x64xf32>
    %116 = arith.addf %115, %114 : vector<2x64xf32>
    %117 = arith.divf %115, %116 : vector<2x64xf32>
    %118 = arith.mulf %105, %82 : vector<2x64xf32>
    %119 = arith.mulf %97, %109 : vector<2x64xf32>
    %120 = arith.addf %118, %119 : vector<2x64xf32>
    %121 = math.tanh %120 : vector<2x64xf32>
    %122 = arith.mulf %117, %121 : vector<2x64xf32>
    %123 = vector.extract_strided_slice %5 {offsets = [6, 0], sizes = [2, 128], strides = [1, 1]} : vector<16x256xf32> to vector<2x128xf32>
    %124 = vector.extract_strided_slice %5 {offsets = [8, 128], sizes = [2, 128], strides = [1, 1]} : vector<16x256xf32> to vector<2x128xf32>
    %125 = tpu.concatenate %123, %124 in 1 : vector<2x128xf32>, vector<2x128xf32> -> vector<2x256xf32>
    %cst_21 = arith.constant dense<0.000000e+00> : vector<2x256xf32>
    %126 = tpu.matmul %122, %6, %cst_21 {dimension_numbers = #tpu.dot_dimension_numbers<[1], [0], [0], [1], [0, 0, 1, 1], [], []>} : vector<2x64xf32>, vector<64x256xf32>, vector<2x256xf32> -> vector<2x256xf32>
    %127 = arith.addf %125, %126 : vector<2x256xf32>
    %128 = vector.extract_strided_slice %127 {offsets = [0, 0], sizes = [2, 32], strides = [1, 1]} : vector<2x256xf32> to vector<2x32xf32>
    %129 = vector.extract_strided_slice %127 {offsets = [0, 128], sizes = [2, 32], strides = [1, 1]} : vector<2x256xf32> to vector<2x32xf32>
    %130 = tpu.concatenate %128, %129 in 1 : vector<2x32xf32>, vector<2x32xf32> -> vector<2x64xf32>
    %131 = arith.negf %130 : vector<2x64xf32>
    %132 = math.exp %131 : vector<2x64xf32>
    %cst_22 = arith.constant 1.000000e+00 : f32
    %133 = vector.broadcast %cst_22 : f32 to vector<2x64xf32>
    %134 = arith.addf %133, %132 : vector<2x64xf32>
    %135 = arith.divf %133, %134 : vector<2x64xf32>
    %136 = vector.extract_strided_slice %127 {offsets = [0, 32], sizes = [2, 32], strides = [1, 1]} : vector<2x256xf32> to vector<2x32xf32>
    %137 = vector.extract_strided_slice %127 {offsets = [0, 160], sizes = [2, 32], strides = [1, 1]} : vector<2x256xf32> to vector<2x32xf32>
    %138 = tpu.concatenate %136, %137 in 1 : vector<2x32xf32>, vector<2x32xf32> -> vector<2x64xf32>
    %139 = arith.negf %138 : vector<2x64xf32>
    %140 = math.exp %139 : vector<2x64xf32>
    %cst_23 = arith.constant 1.000000e+00 : f32
    %141 = vector.broadcast %cst_23 : f32 to vector<2x64xf32>
    %142 = arith.addf %141, %140 : vector<2x64xf32>
    %143 = arith.divf %141, %142 : vector<2x64xf32>
    %144 = vector.extract_strided_slice %127 {offsets = [0, 64], sizes = [2, 32], strides = [1, 1]} : vector<2x256xf32> to vector<2x32xf32>
    %145 = vector.extract_strided_slice %127 {offsets = [0, 192], sizes = [2, 32], strides = [1, 1]} : vector<2x256xf32> to vector<2x32xf32>
    %146 = tpu.concatenate %144, %145 in 1 : vector<2x32xf32>, vector<2x32xf32> -> vector<2x64xf32>
    %147 = math.tanh %146 : vector<2x64xf32>
    %148 = vector.extract_strided_slice %127 {offsets = [0, 96], sizes = [2, 32], strides = [1, 1]} : vector<2x256xf32> to vector<2x32xf32>
    %149 = vector.extract_strided_slice %127 {offsets = [0, 224], sizes = [2, 32], strides = [1, 1]} : vector<2x256xf32> to vector<2x32xf32>
    %150 = tpu.concatenate %148, %149 in 1 : vector<2x32xf32>, vector<2x32xf32> -> vector<2x64xf32>
    %151 = arith.negf %150 : vector<2x64xf32>
    %152 = math.exp %151 : vector<2x64xf32>
    %cst_24 = arith.constant 1.000000e+00 : f32
    %153 = vector.broadcast %cst_24 : f32 to vector<2x64xf32>
    %154 = arith.addf %153, %152 : vector<2x64xf32>
    %155 = arith.divf %153, %154 : vector<2x64xf32>
    %156 = arith.mulf %143, %120 : vector<2x64xf32>
    %157 = arith.mulf %135, %147 : vector<2x64xf32>
    %158 = arith.addf %156, %157 : vector<2x64xf32>
    %159 = math.tanh %158 : vector<2x64xf32>
    %160 = arith.mulf %155, %159 : vector<2x64xf32>
    %161 = vector.extract_strided_slice %5 {offsets = [8, 0], sizes = [2, 128], strides = [1, 1]} : vector<16x256xf32> to vector<2x128xf32>
    %162 = vector.extract_strided_slice %5 {offsets = [6, 128], sizes = [2, 128], strides = [1, 1]} : vector<16x256xf32> to vector<2x128xf32>
    %163 = tpu.concatenate %161, %162 in 1 : vector<2x128xf32>, vector<2x128xf32> -> vector<2x256xf32>
    %cst_25 = arith.constant dense<0.000000e+00> : vector<2x256xf32>
    %164 = tpu.matmul %160, %6, %cst_25 {dimension_numbers = #tpu.dot_dimension_numbers<[1], [0], [0], [1], [0, 0, 1, 1], [], []>} : vector<2x64xf32>, vector<64x256xf32>, vector<2x256xf32> -> vector<2x256xf32>
    %165 = arith.addf %163, %164 : vector<2x256xf32>
    %166 = vector.extract_strided_slice %165 {offsets = [0, 0], sizes = [2, 32], strides = [1, 1]} : vector<2x256xf32> to vector<2x32xf32>
    %167 = vector.extract_strided_slice %165 {offsets = [0, 128], sizes = [2, 32], strides = [1, 1]} : vector<2x256xf32> to vector<2x32xf32>
    %168 = tpu.concatenate %166, %167 in 1 : vector<2x32xf32>, vector<2x32xf32> -> vector<2x64xf32>
    %169 = arith.negf %168 : vector<2x64xf32>
    %170 = math.exp %169 : vector<2x64xf32>
    %cst_26 = arith.constant 1.000000e+00 : f32
    %171 = vector.broadcast %cst_26 : f32 to vector<2x64xf32>
    %172 = arith.addf %171, %170 : vector<2x64xf32>
    %173 = arith.divf %171, %172 : vector<2x64xf32>
    %174 = vector.extract_strided_slice %165 {offsets = [0, 32], sizes = [2, 32], strides = [1, 1]} : vector<2x256xf32> to vector<2x32xf32>
    %175 = vector.extract_strided_slice %165 {offsets = [0, 160], sizes = [2, 32], strides = [1, 1]} : vector<2x256xf32> to vector<2x32xf32>
    %176 = tpu.concatenate %174, %175 in 1 : vector<2x32xf32>, vector<2x32xf32> -> vector<2x64xf32>
    %177 = arith.negf %176 : vector<2x64xf32>
    %178 = math.exp %177 : vector<2x64xf32>
    %cst_27 = arith.constant 1.000000e+00 : f32
    %179 = vector.broadcast %cst_27 : f32 to vector<2x64xf32>
    %180 = arith.addf %179, %178 : vector<2x64xf32>
    %181 = arith.divf %179, %180 : vector<2x64xf32>
    %182 = vector.extract_strided_slice %165 {offsets = [0, 64], sizes = [2, 32], strides = [1, 1]} : vector<2x256xf32> to vector<2x32xf32>
    %183 = vector.extract_strided_slice %165 {offsets = [0, 192], sizes = [2, 32], strides = [1, 1]} : vector<2x256xf32> to vector<2x32xf32>
    %184 = tpu.concatenate %182, %183 in 1 : vector<2x32xf32>, vector<2x32xf32> -> vector<2x64xf32>
    %185 = math.tanh %184 : vector<2x64xf32>
    %186 = vector.extract_strided_slice %165 {offsets = [0, 96], sizes = [2, 32], strides = [1, 1]} : vector<2x256xf32> to vector<2x32xf32>
    %187 = vector.extract_strided_slice %165 {offsets = [0, 224], sizes = [2, 32], strides = [1, 1]} : vector<2x256xf32> to vector<2x32xf32>
    %188 = tpu.concatenate %186, %187 in 1 : vector<2x32xf32>, vector<2x32xf32> -> vector<2x64xf32>
    %189 = arith.negf %188 : vector<2x64xf32>
    %190 = math.exp %189 : vector<2x64xf32>
    %cst_28 = arith.constant 1.000000e+00 : f32
    %191 = vector.broadcast %cst_28 : f32 to vector<2x64xf32>
    %192 = arith.addf %191, %190 : vector<2x64xf32>
    %193 = arith.divf %191, %192 : vector<2x64xf32>
    %194 = arith.mulf %181, %158 : vector<2x64xf32>
    %195 = arith.mulf %173, %185 : vector<2x64xf32>
    %196 = arith.addf %194, %195 : vector<2x64xf32>
    %197 = math.tanh %196 : vector<2x64xf32>
    %198 = arith.mulf %193, %197 : vector<2x64xf32>
    %199 = vector.extract_strided_slice %5 {offsets = [10, 0], sizes = [2, 128], strides = [1, 1]} : vector<16x256xf32> to vector<2x128xf32>
    %200 = vector.extract_strided_slice %5 {offsets = [4, 128], sizes = [2, 128], strides = [1, 1]} : vector<16x256xf32> to vector<2x128xf32>
    %201 = tpu.concatenate %199, %200 in 1 : vector<2x128xf32>, vector<2x128xf32> -> vector<2x256xf32>
    %cst_29 = arith.constant dense<0.000000e+00> : vector<2x256xf32>
    %202 = tpu.matmul %198, %6, %cst_29 {dimension_numbers = #tpu.dot_dimension_numbers<[1], [0], [0], [1], [0, 0, 1, 1], [], []>} : vector<2x64xf32>, vector<64x256xf32>, vector<2x256xf32> -> vector<2x256xf32>
    %203 = arith.addf %201, %202 : vector<2x256xf32>
    %204 = vector.extract_strided_slice %203 {offsets = [0, 0], sizes = [2, 32], strides = [1, 1]} : vector<2x256xf32> to vector<2x32xf32>
    %205 = vector.extract_strided_slice %203 {offsets = [0, 128], sizes = [2, 32], strides = [1, 1]} : vector<2x256xf32> to vector<2x32xf32>
    %206 = tpu.concatenate %204, %205 in 1 : vector<2x32xf32>, vector<2x32xf32> -> vector<2x64xf32>
    %207 = arith.negf %206 : vector<2x64xf32>
    %208 = math.exp %207 : vector<2x64xf32>
    %cst_30 = arith.constant 1.000000e+00 : f32
    %209 = vector.broadcast %cst_30 : f32 to vector<2x64xf32>
    %210 = arith.addf %209, %208 : vector<2x64xf32>
    %211 = arith.divf %209, %210 : vector<2x64xf32>
    %212 = vector.extract_strided_slice %203 {offsets = [0, 32], sizes = [2, 32], strides = [1, 1]} : vector<2x256xf32> to vector<2x32xf32>
    %213 = vector.extract_strided_slice %203 {offsets = [0, 160], sizes = [2, 32], strides = [1, 1]} : vector<2x256xf32> to vector<2x32xf32>
    %214 = tpu.concatenate %212, %213 in 1 : vector<2x32xf32>, vector<2x32xf32> -> vector<2x64xf32>
    %215 = arith.negf %214 : vector<2x64xf32>
    %216 = math.exp %215 : vector<2x64xf32>
    %cst_31 = arith.constant 1.000000e+00 : f32
    %217 = vector.broadcast %cst_31 : f32 to vector<2x64xf32>
    %218 = arith.addf %217, %216 : vector<2x64xf32>
    %219 = arith.divf %217, %218 : vector<2x64xf32>
    %220 = vector.extract_strided_slice %203 {offsets = [0, 64], sizes = [2, 32], strides = [1, 1]} : vector<2x256xf32> to vector<2x32xf32>
    %221 = vector.extract_strided_slice %203 {offsets = [0, 192], sizes = [2, 32], strides = [1, 1]} : vector<2x256xf32> to vector<2x32xf32>
    %222 = tpu.concatenate %220, %221 in 1 : vector<2x32xf32>, vector<2x32xf32> -> vector<2x64xf32>
    %223 = math.tanh %222 : vector<2x64xf32>
    %224 = vector.extract_strided_slice %203 {offsets = [0, 96], sizes = [2, 32], strides = [1, 1]} : vector<2x256xf32> to vector<2x32xf32>
    %225 = vector.extract_strided_slice %203 {offsets = [0, 224], sizes = [2, 32], strides = [1, 1]} : vector<2x256xf32> to vector<2x32xf32>
    %226 = tpu.concatenate %224, %225 in 1 : vector<2x32xf32>, vector<2x32xf32> -> vector<2x64xf32>
    %227 = arith.negf %226 : vector<2x64xf32>
    %228 = math.exp %227 : vector<2x64xf32>
    %cst_32 = arith.constant 1.000000e+00 : f32
    %229 = vector.broadcast %cst_32 : f32 to vector<2x64xf32>
    %230 = arith.addf %229, %228 : vector<2x64xf32>
    %231 = arith.divf %229, %230 : vector<2x64xf32>
    %232 = arith.mulf %219, %196 : vector<2x64xf32>
    %233 = arith.mulf %211, %223 : vector<2x64xf32>
    %234 = arith.addf %232, %233 : vector<2x64xf32>
    %235 = math.tanh %234 : vector<2x64xf32>
    %236 = arith.mulf %231, %235 : vector<2x64xf32>
    %237 = vector.extract_strided_slice %5 {offsets = [12, 0], sizes = [2, 128], strides = [1, 1]} : vector<16x256xf32> to vector<2x128xf32>
    %238 = vector.extract_strided_slice %5 {offsets = [2, 128], sizes = [2, 128], strides = [1, 1]} : vector<16x256xf32> to vector<2x128xf32>
    %239 = tpu.concatenate %237, %238 in 1 : vector<2x128xf32>, vector<2x128xf32> -> vector<2x256xf32>
    %cst_33 = arith.constant dense<0.000000e+00> : vector<2x256xf32>
    %240 = tpu.matmul %236, %6, %cst_33 {dimension_numbers = #tpu.dot_dimension_numbers<[1], [0], [0], [1], [0, 0, 1, 1], [], []>} : vector<2x64xf32>, vector<64x256xf32>, vector<2x256xf32> -> vector<2x256xf32>
    %241 = arith.addf %239, %240 : vector<2x256xf32>
    %242 = vector.extract_strided_slice %241 {offsets = [0, 0], sizes = [2, 32], strides = [1, 1]} : vector<2x256xf32> to vector<2x32xf32>
    %243 = vector.extract_strided_slice %241 {offsets = [0, 128], sizes = [2, 32], strides = [1, 1]} : vector<2x256xf32> to vector<2x32xf32>
    %244 = tpu.concatenate %242, %243 in 1 : vector<2x32xf32>, vector<2x32xf32> -> vector<2x64xf32>
    %245 = arith.negf %244 : vector<2x64xf32>
    %246 = math.exp %245 : vector<2x64xf32>
    %cst_34 = arith.constant 1.000000e+00 : f32
    %247 = vector.broadcast %cst_34 : f32 to vector<2x64xf32>
    %248 = arith.addf %247, %246 : vector<2x64xf32>
    %249 = arith.divf %247, %248 : vector<2x64xf32>
    %250 = vector.extract_strided_slice %241 {offsets = [0, 32], sizes = [2, 32], strides = [1, 1]} : vector<2x256xf32> to vector<2x32xf32>
    %251 = vector.extract_strided_slice %241 {offsets = [0, 160], sizes = [2, 32], strides = [1, 1]} : vector<2x256xf32> to vector<2x32xf32>
    %252 = tpu.concatenate %250, %251 in 1 : vector<2x32xf32>, vector<2x32xf32> -> vector<2x64xf32>
    %253 = arith.negf %252 : vector<2x64xf32>
    %254 = math.exp %253 : vector<2x64xf32>
    %cst_35 = arith.constant 1.000000e+00 : f32
    %255 = vector.broadcast %cst_35 : f32 to vector<2x64xf32>
    %256 = arith.addf %255, %254 : vector<2x64xf32>
    %257 = arith.divf %255, %256 : vector<2x64xf32>
    %258 = vector.extract_strided_slice %241 {offsets = [0, 64], sizes = [2, 32], strides = [1, 1]} : vector<2x256xf32> to vector<2x32xf32>
    %259 = vector.extract_strided_slice %241 {offsets = [0, 192], sizes = [2, 32], strides = [1, 1]} : vector<2x256xf32> to vector<2x32xf32>
    %260 = tpu.concatenate %258, %259 in 1 : vector<2x32xf32>, vector<2x32xf32> -> vector<2x64xf32>
    %261 = math.tanh %260 : vector<2x64xf32>
    %262 = vector.extract_strided_slice %241 {offsets = [0, 96], sizes = [2, 32], strides = [1, 1]} : vector<2x256xf32> to vector<2x32xf32>
    %263 = vector.extract_strided_slice %241 {offsets = [0, 224], sizes = [2, 32], strides = [1, 1]} : vector<2x256xf32> to vector<2x32xf32>
    %264 = tpu.concatenate %262, %263 in 1 : vector<2x32xf32>, vector<2x32xf32> -> vector<2x64xf32>
    %265 = arith.negf %264 : vector<2x64xf32>
    %266 = math.exp %265 : vector<2x64xf32>
    %cst_36 = arith.constant 1.000000e+00 : f32
    %267 = vector.broadcast %cst_36 : f32 to vector<2x64xf32>
    %268 = arith.addf %267, %266 : vector<2x64xf32>
    %269 = arith.divf %267, %268 : vector<2x64xf32>
    %270 = arith.mulf %257, %234 : vector<2x64xf32>
    %271 = arith.mulf %249, %261 : vector<2x64xf32>
    %272 = arith.addf %270, %271 : vector<2x64xf32>
    %273 = math.tanh %272 : vector<2x64xf32>
    %274 = arith.mulf %269, %273 : vector<2x64xf32>
    %275 = vector.extract_strided_slice %5 {offsets = [14, 0], sizes = [2, 128], strides = [1, 1]} : vector<16x256xf32> to vector<2x128xf32>
    %276 = vector.extract_strided_slice %5 {offsets = [0, 128], sizes = [2, 128], strides = [1, 1]} : vector<16x256xf32> to vector<2x128xf32>
    %277 = tpu.concatenate %275, %276 in 1 : vector<2x128xf32>, vector<2x128xf32> -> vector<2x256xf32>
    %cst_37 = arith.constant dense<0.000000e+00> : vector<2x256xf32>
    %278 = tpu.matmul %274, %6, %cst_37 {dimension_numbers = #tpu.dot_dimension_numbers<[1], [0], [0], [1], [0, 0, 1, 1], [], []>} : vector<2x64xf32>, vector<64x256xf32>, vector<2x256xf32> -> vector<2x256xf32>
    %279 = arith.addf %277, %278 : vector<2x256xf32>
    %280 = vector.extract_strided_slice %279 {offsets = [0, 0], sizes = [2, 32], strides = [1, 1]} : vector<2x256xf32> to vector<2x32xf32>
    %281 = vector.extract_strided_slice %279 {offsets = [0, 128], sizes = [2, 32], strides = [1, 1]} : vector<2x256xf32> to vector<2x32xf32>
    %282 = tpu.concatenate %280, %281 in 1 : vector<2x32xf32>, vector<2x32xf32> -> vector<2x64xf32>
    %283 = arith.negf %282 : vector<2x64xf32>
    %284 = math.exp %283 : vector<2x64xf32>
    %cst_38 = arith.constant 1.000000e+00 : f32
    %285 = vector.broadcast %cst_38 : f32 to vector<2x64xf32>
    %286 = arith.addf %285, %284 : vector<2x64xf32>
    %287 = arith.divf %285, %286 : vector<2x64xf32>
    %288 = vector.extract_strided_slice %279 {offsets = [0, 32], sizes = [2, 32], strides = [1, 1]} : vector<2x256xf32> to vector<2x32xf32>
    %289 = vector.extract_strided_slice %279 {offsets = [0, 160], sizes = [2, 32], strides = [1, 1]} : vector<2x256xf32> to vector<2x32xf32>
    %290 = tpu.concatenate %288, %289 in 1 : vector<2x32xf32>, vector<2x32xf32> -> vector<2x64xf32>
    %291 = arith.negf %290 : vector<2x64xf32>
    %292 = math.exp %291 : vector<2x64xf32>
    %cst_39 = arith.constant 1.000000e+00 : f32
    %293 = vector.broadcast %cst_39 : f32 to vector<2x64xf32>
    %294 = arith.addf %293, %292 : vector<2x64xf32>
    %295 = arith.divf %293, %294 : vector<2x64xf32>
    %296 = vector.extract_strided_slice %279 {offsets = [0, 64], sizes = [2, 32], strides = [1, 1]} : vector<2x256xf32> to vector<2x32xf32>
    %297 = vector.extract_strided_slice %279 {offsets = [0, 192], sizes = [2, 32], strides = [1, 1]} : vector<2x256xf32> to vector<2x32xf32>
    %298 = tpu.concatenate %296, %297 in 1 : vector<2x32xf32>, vector<2x32xf32> -> vector<2x64xf32>
    %299 = math.tanh %298 : vector<2x64xf32>
    %300 = vector.extract_strided_slice %279 {offsets = [0, 96], sizes = [2, 32], strides = [1, 1]} : vector<2x256xf32> to vector<2x32xf32>
    %301 = vector.extract_strided_slice %279 {offsets = [0, 224], sizes = [2, 32], strides = [1, 1]} : vector<2x256xf32> to vector<2x32xf32>
    %302 = tpu.concatenate %300, %301 in 1 : vector<2x32xf32>, vector<2x32xf32> -> vector<2x64xf32>
    %303 = arith.negf %302 : vector<2x64xf32>
    %304 = math.exp %303 : vector<2x64xf32>
    %cst_40 = arith.constant 1.000000e+00 : f32
    %305 = vector.broadcast %cst_40 : f32 to vector<2x64xf32>
    %306 = arith.addf %305, %304 : vector<2x64xf32>
    %307 = arith.divf %305, %306 : vector<2x64xf32>
    %308 = arith.mulf %295, %272 : vector<2x64xf32>
    %309 = arith.mulf %287, %299 : vector<2x64xf32>
    %310 = arith.addf %308, %309 : vector<2x64xf32>
    %311 = math.tanh %310 : vector<2x64xf32>
    %312 = arith.mulf %307, %311 : vector<2x64xf32>
    %c0_41 = arith.constant 0 : index
    %c0_42 = arith.constant 0 : index
    %313 = vector.load %arg4[%c0_41, %c0_42] : memref<64x3xf32, #tpu.memory_space<vmem>>, vector<64x3xf32>
    %cst_43 = arith.constant dense<0.000000e+00> : vector<2x3xf32>
    %314 = tpu.matmul %312, %313, %cst_43 {dimension_numbers = #tpu.dot_dimension_numbers<[1], [0], [0], [1], [0, 0, 1, 1], [], []>} : vector<2x64xf32>, vector<64x3xf32>, vector<2x3xf32> -> vector<2x3xf32>
    %c0_44 = arith.constant 0 : index
    %c0_45 = arith.constant 0 : index
    %315 = vector.load %arg5[%c0_44, %c0_45] : memref<1x3xf32, #tpu.memory_space<vmem>>, vector<1x3xf32>
    %316 = vector.broadcast %315 : vector<1x3xf32> to vector<2x3xf32>
    %317 = arith.addf %314, %316 : vector<2x3xf32>
    %c0_46 = arith.constant 0 : index
    %c0_47 = arith.constant 0 : index
    %318 = vector.load %arg6[%c0_46, %c0_47] : memref<2x3xf32, #tpu.memory_space<vmem>>, vector<2x3xf32>
    tpu.vector_store %arg6[%c0_46, %c0_47], %317 {strides = array<i32>} : memref<2x3xf32, #tpu.memory_space<vmem>>, vector<2x3xf32>,
    return
  }
}

</mosaic_0001>

<bundles_post_ra>
// kernel: phobert_lstm_forward.4
= control target key start
LH: loop header
LB: loop body
LE: loop exit
PB: predicated region body
PF: predicated region fallthrough
CT: control target
= control target key end

     0   :  { %vm18_vm0 = vcmask 261120   ;;  %s118_s0 = inlined_call_operand.vmem [shape: f32[16,32], index: 0, kind: input, shape index: {}]   ;;  %s119_s1 = inlined_call_operand.vmem [shape: f32[1,32], index: 1, kind: input, shape index: {}]   ;;  %s120_s2 = inlined_call_operand.vmem [shape: f32[1,32], index: 2, kind: input, shape index: {}]   ;;  %s121_s3 = inlined_call_operand.vmem [shape: f32[16,32], index: 3, kind: output, shape index: {}]  }
   0x1   :  { %v14_v0 = vld [vmem:[%s118_s0] sm:$0xff]  ;;  %v15_v1 = vld [vmem:[%s118_s0 + $0x8] sm:$0xff] }
   0x2   :  { %v19_v2 = vsel %vm18_vm0, %v14_v0, 0.0  ;;  %v22_v3 = vsel %vm18_vm0, %v15_v1, 0.0  ;;  %v68_v21 = vld [vmem:[%s119_s1] ss:$0 sm:$0xff] }
   0x3   :  { %20 = vadd.xlane.f32.xlu0 %v19_v2  ;;  %v69_v23 = vld [vmem:[%s120_s2] ss:$0 sm:$0xff] }
   0x7   :  { %23 = vadd.xlane.f32.xlu0 %v22_v3 }
  0x90   :  { %v21_v4 = vpop.xlane.xlu0 %20 }
  0x91   :  { %v26_v5 = vmul.f32 0.03125, %v21_v4 }
  0x93   :  { %v28_v6 = vsub.f32 %v14_v0, %v26_v5 }
  0x94   :  { %v24_v7 = vpop.xlane.xlu0 %23 }
  0x95   :  { %v27_v8 = vmul.f32 0.03125, %v24_v7  ;;  %v30_v9 = vmul.f32 %v28_v6, %v28_v6 }
  0x97   :  { %v29_v10 = vsub.f32 %v15_v1, %v27_v8  ;;  %v32_v11 = vsel %vm18_vm0, %v30_v9, 0.0 }
  0x98   :  { %33 = vadd.xlane.f32.xlu1 %v32_v11 }
  0x99   :  { %v31_v12 = vmul.f32 %v29_v10, %v29_v10 }
  0x9b   :  { %v35_v13 = vsel %vm18_vm0, %v31_v12, 0.0 }
  0x9c   :  { %36 = vadd.xlane.f32.xlu1 %v35_v13 }
 0x125   :  { %v34_v14 = vpop.xlane.xlu1 %33 }
 0x126   :  { %v38_v15 = vmul.f32 0.03125, %v34_v14 }
 0x128   :  { %v40_v16 = vadd.f32 1e-05, %v38_v15 }
 0x129   :  { %v37_v17 = vpop.xlane.xlu1 %36 }
 0x12a   :  { %70 = vrsqrt.f32 %v40_v16  ;;  %v39_v18 = vmul.f32 0.03125, %v37_v17 }
 0x12c   :  { %v41_v19 = vadd.f32 1e-05, %v39_v18 }
 0x12e   :  { %72 = vrsqrt.f32 %v41_v19 }
 0x134   :  { %v71_v20 = vpop.eup %70 }
 0x135   :  { %v44_v22 = vmul.f32 %v71_v20, %v28_v6 }
 0x137   :  { %v52_v24 = vmul.f32 %v68_v21, %v44_v22 }
 0x138   :  { %v73_v25 = vpop.eup %72 }
 0x139   :  { %v60_v26 = vadd.f32 %v69_v23, %v52_v24  ;;  %v45_v27 = vmul.f32 %v73_v25, %v29_v10 }
 0x13b   :  { %62 = vst.msk [vmem:[%s121_s3] sm:$0xff] %vm18_vm0, %v60_v26  ;;  %v53_v28 = vmul.f32 %v68_v21, %v45_v27 }
 0x13d   :  { %v61_v29 = vadd.f32 %v69_v23, %v53_v28 }
 0x13f   :  { %63 = vst.msk [vmem:[%s121_s3 + $0x8] sm:$0xff] %vm18_vm0, %v61_v29 }

// kernel: phobert_lstm_forward.5
= control target key start
LH: loop header
LB: loop body
LE: loop exit
PB: predicated region body
PF: predicated region fallthrough
CT: control target
= control target key end

     0   :  { %vm60_vm0 = vcmask 261120   ;;  %v1467_v8 = vmov 0.0   ;;  %vm1468_vm1 = vmmov 0   ;;  %s1470_s26 = smov 96   ;;  %s1471_s27 = smov 80   ;;  %vm146_vm2 = vcmask 130048   ;;  %s1737_s2 = inlined_call_operand.vmem [shape: f32[32,96], index: 2, kind: input, shape index: {}]   ;;  %s1738_s0 = inlined_call_operand.vmem [shape: f32[16,32], index: 0, kind: input, shape index: {}]   ;;  %s1739_s3 = inlined_call_operand.vmem [shape: f32[1,96], index: 3, kind: input, shape index: {}]   ;;  %s1740_s1 = inlined_call_operand.vmem [shape: f32[2,8], index: 1, kind: input, shape index: {}]   ;;  %s1741_s4 = inlined_call_operand.vmem [shape: f32[32,32], index: 4, kind: input, shape index: {}]   ;;  %s1742_s5 = inlined_call_operand.vmem [shape: f32[1,32], index: 5, kind: input, shape index: {}]   ;;  %s1743_s8 = inlined_call_operand.vmem [shape: f32[32,64], index: 8, kind: input, shape index: {}]   ;;  %s1744_s6 = inlined_call_operand.vmem [shape: f32[1,32], index: 6, kind: input, shape index: {}]   ;;  %s1745_s7 = inlined_call_operand.vmem [shape: f32[1,32], index: 7, kind: input, shape index: {}]   ;;  %s1746_s10 = inlined_call_operand.vmem [shape: f32[64,32], index: 10, kind: input, shape index: {}]   ;;  %s1747_s9 = inlined_call_operand.vmem [shape: f32[1,64], index: 9, kind: input, shape index: {}]   ;;  %s1748_s11 = inlined_call_operand.vmem [shape: f32[1,32], index: 11, kind: input, shape index: {}]   ;;  %s1749_s12 = inlined_call_operand.vmem [shape: f32[1,32], index: 12, kind: input, shape index: {}]   ;;  %s1750_s13 = inlined_call_operand.vmem [shape: f32[1,32], index: 13, kind: input, shape index: {}]   ;;  %s1751_s14 = inlined_call_operand.vmem [shape: f32[16,32], index: 14, kind: output, shape index: {}]  }
   0x1   :  { %v49_v0 = vld [vmem:[%s1737_s2] sm:$0xff]  ;;  %v50_v1 = vld [vmem:[%s1737_s2 + $0x8] sm:$0xff]  ;;  %v51_v2 = vld [vmem:[%s1737_s2 + $0x10] sm:$0xff]  ;;  %1320 = vmatprep.subr.mxu0 %v1467_v8  ;;  %1322 = vmatprep.mubr.msk.f32.mxu0 %vm1468_vm1, %v1467_v8  ;;  %v222_v20 = vlaneseq  ;;  %vm227_vm3 = vcmask 64512   ;;  %s1473_s29 = smov 48   ;;  %s1474_s22 = smov 16  }
   0x2   :  { %v1391_v3 = vpack.c.bf16 %v50_v1, %v49_v0  ;;  %v52_v4 = vld [vmem:[%s1737_s2 + $0x18] sm:$0xff]  ;;  %v1565_v5 = vld [vmem:[%s1738_s0] sm:$0xff]  ;;  %v1572_v7 = vld [vmem:[%s1738_s0 + $0x8] sm:$0xff]  ;;  %s1469_s0 = smov 112   ;;  %vm1093_vm4 = vcmask 523264  }
   0x3   :  { %v1395_v6 = vpack.c.bf16 %v52_v4, %v51_v2  ;;  %1307 = vmatprep.mubr.msk.f32.mxu1 %vm60_vm0, %v1565_v5  ;;  %v1227_v9 = vld [vmem:[%s1739_s3] ss:$0 sm:$0xff]  ;;  %v223_v21 = vshrl.u32 %v222_v20, 7 }
   0x4   :  { %1392 = vmatprep.subr.bf16.mxu1 %v1391_v3  ;;  %v142_v23 = vld [vmem:[%s1740_s1] sm:$0x3]  ;;  %s1472_s1 = smov 64  }
   0x5   :  { %1394 = vmatpush3.bf16.msra.mxu1 %v1391_v3  ;;  %v224_v22 = vsub.s32 0, %v223_v21  ;;  %v567_v29 = vsub.s32 1, %v223_v21 }
   0x6   :  { %1396 = vmatprep.subr.bf16.mxu1 %v1395_v6 }
   0x7   :  { %v225_v24 = vrot.slane %v142_v23, %v224_v22  ;;  %v568_v35 = vrot.slane %v142_v23, %v567_v29  ;;  %v829_v22 = vld [vmem:[%s1741_s4] sm:$0xff]  ;;  %v830_v23 = vld [vmem:[%s1741_s4 + $0x8] sm:$0xff] }
   0x9   :  { %1398 = vmatpush3.bf16.msra.mxu1 %v1395_v6 }
   0xa   :  { %1310 = vmatprep.subr.mxu1 %v1467_v8 }
   0xc   :  { %1308 = vmatmul.mubr.msk.f32.vlgmr.msra.gmra.mrb[0].mxu1 %vm60_vm0, %v1572_v7 }
   0xd   :  { %1312 = vmatprep.mubr.msk.f32.mxu1 %vm1468_vm1, %v1467_v8 }
  0xdf   :  { %v1309_v10 = vpop.f32.mrb[0].mxu1 }
  0xe0   :  { %v133_v11 = vpop.f32.mrb[1].mxu1  ;;  %v1589_v13 = vadd.f32 %v1309_v10, %v1227_v9 }
  0xe1   :  { %v1585_v12 = vadd.f32 %v1227_v9, %v133_v11 }
  0xe3   :  { %315 = vrot.lane.b32.xlu1 %v1585_v12, %s1469_s0  ;;  %144 = vrot.lane.b32.xlu0 %v1585_v12, %s1470_s26 }
  0xe7   :  { %488 = vrot.lane.b32.xlu1 %v1589_v13, %s1470_s26  ;;  %317 = vrot.lane.b32.xlu0 %v1585_v12, %s1471_s27 }
  0xeb   :  { %657 = vrot.lane.b32.xlu1 %v1589_v13, %s1469_s0  ;;  %659 = vrot.lane.b32.xlu0 %v1589_v13, %s1471_s27 }
 0x155   :  { %v145_v14 = vpop.permute.xlu0 %144  ;;  %v316_v15 = vpop.permute.xlu1 %315 }
 0x156   :  { %1311 = vmatpush3.xpose.msk.msra.mxu1 %vm146_vm2, %v145_v14 }
 0x157   :  { %1315 = vmatprep.subr.mxu1 %v1467_v8 }
 0x159   :  { %1313 = vmatmul.mubr.msk.f32.vlgmr.msra.gmra.mrb[2].mxu1 %vm146_vm2, %v1585_v12  ;;  %v318_v16 = vpop.permute.xlu0 %317  ;;  %v489_v17 = vpop.permute.xlu1 %488 }
 0x15a   :  { %1321 = vmatpush3.xpose.msk.msra.mxu0 %vm146_vm2, %v318_v16  ;;  %1317 = vmatprep.mubr.msk.f32.mxu1 %vm1468_vm1, %v1467_v8 }
 0x15b   :  { %1330 = vmatprep.subr.mxu0 %v1467_v8 }
 0x15d   :  { %1323 = vmatmul.mubr.msk.f32.vlgmr.msra.gmra.mrb[0].mxu0 %vm146_vm2, %v316_v15  ;;  %v660_v18 = vpop.permute.xlu0 %659  ;;  %v658_v19 = vpop.permute.xlu1 %657 }
 0x15e   :  { %1331 = vmatpush3.xpose.msk.msra.mxu0 %vm146_vm2, %v489_v17  ;;  %1332 = vmatprep.mubr.msk.f32.mxu0 %vm1468_vm1, %v1467_v8 }
 0x15f   :  { %1340 = vmatprep.subr.mxu0 %v1467_v8 }
 0x161   :  { %1333 = vmatmul.mubr.msk.f32.vlgmr.msra.gmra.mrb[2].mxu0 %vm146_vm2, %v1589_v13 }
 0x162   :  { %1341 = vmatpush3.xpose.msk.msra.mxu0 %vm146_vm2, %v660_v18  ;;  %1342 = vmatprep.mubr.msk.f32.mxu0 %vm1468_vm1, %v1467_v8 }
 0x165   :  { %1343 = vmatmul.mubr.msk.f32.vlgmr.msra.gmra.mrb[4].mxu0 %vm146_vm2, %v658_v19 }
 0x22c   :  { %v217_v25 = vpop.f32.mrb[2].mxu1 }
 0x22d   :  { %v221_v26 = vmul.f32 0.25, %v217_v25  ;;  %v1314_v27 = vpop.f32.mrb[3].mxu1  ;;  %v831_v25 = vld [vmem:[%s1741_s4 + $0x10] sm:$0xff] }
 0x22f   :  { %v226_v28 = vadd.f32 %v225_v24, %v221_v26 }
 0x230   :  { %v389_v30 = vpop.f32.mrb[0].mxu0 }
 0x231   :  { %v393_v31 = vmul.f32 0.25, %v389_v30  ;;  %v1324_v32 = vpop.f32.mrb[1].mxu0  ;;  %v228_v33 = vsel %vm227_vm3, %v226_v28, -inf }
 0x232   :  { %229 = vmax.xlane.f32.xlu0 %v228_v33 }
 0x233   :  { %v394_v34 = vadd.f32 %v393_v31, %v225_v24  ;;  %v1399_v24 = vpack.c.bf16 %v830_v23, %v829_v22  ;;  %v1082_v23 = vld [vmem:[%s1746_s10 + $0x20] sm:$0xff] }
 0x234   :  { %v560_v36 = vpop.f32.mrb[2].mxu0 }
 0x235   :  { %v564_v37 = vmul.f32 0.25, %v560_v36  ;;  %v1334_v38 = vpop.f32.mrb[3].mxu0  ;;  %v395_v39 = vsel %vm227_vm3, %v394_v34, -inf  ;;  %1400 = vmatprep.subr.bf16.mxu0 %v1399_v24 }
 0x236   :  { %396 = vmax.xlane.f32.xlu1 %v395_v39  ;;  %1402 = vmatpush3.bf16.msra.mxu0 %v1399_v24  ;;  %v1242_v39 = vld [vmem:[%s1742_s5] ss:$0 sm:$0xff]  ;;  %v1083_v24 = vld [vmem:[%s1746_s10 + $0x28] sm:$0xff] }
 0x237   :  { %v569_v40 = vadd.f32 %v568_v35, %v564_v37 }
 0x238   :  { %v731_v41 = vpop.f32.mrb[4].mxu0 }
 0x239   :  { %v735_v42 = vmul.f32 0.25, %v731_v41  ;;  %v1344_v43 = vpop.f32.mrb[5].mxu0  ;;  %v570_v44 = vsel %vm227_vm3, %v569_v40, -inf }
 0x23a   :  { %571 = vmax.xlane.f32.xlu0 %v570_v44 }
 0x23b   :  { %v736_v45 = vadd.f32 %v735_v42, %v568_v35 }
 0x23d   :  { %v737_v46 = vsel %vm227_vm3, %v736_v45, -inf }
 0x23e   :  { %738 = vmax.xlane.f32.xlu0 %v737_v46 }
 0x247   :  { %239 = vrot.lane.b32.xlu1 %v1585_v12, %s1472_s1 }
 0x2bf   :  { %v230_v47 = vpop.xlane.xlu0 %229 }
 0x2c0   :  { %v231_v48 = vsub.f32 %v226_v28, %v230_v47 }
 0x2c2   :  { %v232_v49 = vmul.f32 1.442695, %v231_v48 }
 0x2c3   :  { %v397_v50 = vpop.xlane.xlu1 %396 }
 0x2c4   :  { %1439 = vpow2.f32 %v232_v49  ;;  %v398_v51 = vsub.f32 %v394_v34, %v397_v50 }
 0x2c6   :  { %v399_v52 = vmul.f32 1.442695, %v398_v51 }
 0x2c7   :  { %v240_v53 = vpop.permute.xlu1 %239  ;;  %v572_v54 = vpop.xlane.xlu0 %571 }
 0x2c8   :  { %1441 = vpow2.f32 %v399_v52  ;;  %v573_v55 = vsub.f32 %v569_v40, %v572_v54  ;;  %1316 = vmatpush3.msra.mxu1 %v240_v53 }
 0x2c9   :  { %1325 = vmatprep.subr.mxu1 %v1467_v8 }
 0x2ca   :  { %v574_v56 = vmul.f32 1.442695, %v573_v55 }
 0x2cb   :  { %v739_v57 = vpop.xlane.xlu0 %738 }
 0x2cc   :  { %1443 = vpow2.f32 %v574_v56  ;;  %v740_v58 = vsub.f32 %v736_v45, %v739_v57  ;;  %v969_v57 = vld [vmem:[%s1743_s8 + $0x8] sm:$0xff] }
 0x2ce   :  { %v1440_v59 = vpop.eup %1439  ;;  %v741_v60 = vmul.f32 1.442695, %v740_v58 }
 0x2cf   :  { %v234_v61 = vsel %vm227_vm3, %v1440_v59, 0.0 }
 0x2d0   :  { %1445 = vpow2.f32 %v741_v60  ;;  %235 = vadd.xlane.f32.xlu1 %v234_v61  ;;  %v971_v60 = vld [vmem:[%s1743_s8 + $0x18] sm:$0xff] }
 0x2d2   :  { %v1442_v62 = vpop.eup %1441 }
 0x2d3   :  { %v401_v63 = vsel %vm227_vm3, %v1442_v62, 0.0 }
 0x2d4   :  { %402 = vadd.xlane.f32.xlu0 %v401_v63 }
 0x2d6   :  { %v1444_v0 = vpop.eup %1443 }
 0x2d7   :  { %v576_v1 = vsel %vm227_vm3, %v1444_v0, 0.0 }
 0x2d8   :  { %577 = vadd.xlane.f32.xlu1 %v576_v1 }
 0x2da   :  { %v1446_v2 = vpop.eup %1445 }
 0x2db   :  { %v743_v3 = vsel %vm227_vm3, %v1446_v2, 0.0 }
 0x2dc   :  { %744 = vadd.xlane.f32.xlu0 %v743_v3 }
 0x2e9   :  { %581 = vrot.lane.b32.xlu1 %v1589_v13, %s1472_s1 }
 0x2ed   :  { %748 = vrot.lane.b32.xlu1 %v1589_v13, %s1473_s29 }
 0x2f2   :  { %406 = vrot.lane.b32.xlu0 %v1585_v12, %s1473_s29 }
 0x35d   :  { %v236_v4 = vpop.xlane.xlu1 %235 }
 0x35e   :  { %1447 = vrcp.f32 %v236_v4 }
 0x361   :  { %v403_v6 = vpop.xlane.xlu0 %402 }
 0x362   :  { %1449 = vrcp.f32 %v403_v6  ;;  %v1245_v6 = vld [vmem:[%s1744_s6] ss:$0 sm:$0xff] }
 0x365   :  { %v578_v9 = vpop.xlane.xlu1 %577 }
 0x366   :  { %1451 = vrcp.f32 %v578_v9 }
 0x368   :  { %v1448_v10 = vpop.eup %1447 }
 0x369   :  { %v238_v11 = vmul.f32 %v1448_v10, %v1440_v59  ;;  %v745_v14 = vpop.xlane.xlu0 %744  ;;  %v582_v13 = vpop.permute.xlu1 %581  ;;  %v970_v59 = vld [vmem:[%s1743_s8 + $0x10] sm:$0xff]  ;;  %v1246_v10 = vld [vmem:[%s1745_s7] ss:$0 sm:$0xff] }
 0x36a   :  { %1453 = vrcp.f32 %v745_v14  ;;  %v1411_v61 = vpack.c.bf16 %v971_v60, %v970_v59 }
 0x36b   :  { %1318 = vmatmul.mubr.msk.f32.vlgmr.msra.gmra.mrb[4].mxu1 %vm227_vm3, %v238_v11 }
 0x36c   :  { %v1450_v15 = vpop.eup %1449  ;;  %1327 = vmatprep.mubr.msk.f32.mxu1 %vm1468_vm1, %v1467_v8 }
 0x36d   :  { %v405_v16 = vmul.f32 %v1450_v15, %v1442_v62  ;;  %v407_v17 = vpop.permute.xlu0 %406  ;;  %v749_v19 = vpop.permute.xlu1 %748 }
 0x36e   :  { %1326 = vmatpush3.msra.mxu1 %v407_v17 }
 0x36f   :  { %1328 = vmatmul.mubr.msk.f32.vlgmr.msra.gmra.mrb[6].mxu1 %vm227_vm3, %v405_v16  ;;  %1335 = vmatprep.subr.mxu1 %v1467_v8 }
 0x370   :  { %v1452_v12 = vpop.eup %1451  ;;  %1336 = vmatpush3.msra.mxu1 %v582_v13  ;;  %1337 = vmatprep.mubr.msk.f32.mxu1 %vm1468_vm1, %v1467_v8 }
 0x371   :  { %v580_v18 = vmul.f32 %v1452_v12, %v1444_v0  ;;  %1345 = vmatprep.subr.mxu1 %v1467_v8  ;;  %v1078_v12 = vld [vmem:[%s1746_s10] sm:$0xff] }
 0x373   :  { %1338 = vmatmul.mubr.msk.f32.vlgmr.msra.gmra.mrb[8].mxu1 %vm227_vm3, %v580_v18  ;;  %v1079_v18 = vld [vmem:[%s1746_s10 + $0x8] sm:$0xff] }
 0x374   :  { %v1454_v20 = vpop.eup %1453  ;;  %1346 = vmatpush3.msra.mxu1 %v749_v19  ;;  %1347 = vmatprep.mubr.msk.f32.mxu1 %vm1468_vm1, %v1467_v8  ;;  %v832_v8 = vld [vmem:[%s1741_s4 + $0x18] sm:$0xff]  ;;  %v1415_v19 = vpack.c.bf16 %v1079_v18, %v1078_v12  ;;  %v1254_v12 = vld [vmem:[%s1750_s13] ss:$0 sm:$0xff] }
 0x375   :  { %v747_v21 = vmul.f32 %v1454_v20, %v1446_v2  ;;  %v1403_v26 = vpack.c.bf16 %v832_v8, %v831_v25  ;;  %v1080_v20 = vld [vmem:[%s1746_s10 + $0x10] sm:$0xff]  ;;  %v1423_v25 = vpack.c.bf16 %v1083_v24, %v1082_v23 }
 0x376   :  { %v1084_v8 = vld [vmem:[%s1746_s10 + $0x30] sm:$0xff] }
 0x377   :  { %1348 = vmatmul.mubr.msk.f32.vlgmr.msra.gmra.mrb[10].mxu1 %vm227_vm3, %v747_v21  ;;  %1404 = vmatprep.subr.bf16.mxu0 %v1403_v26  ;;  %v1081_v21 = vld [vmem:[%s1746_s10 + $0x18] sm:$0xff] }
 0x378   :  { %1406 = vmatpush3.bf16.msra.mxu0 %v1403_v26  ;;  %v1419_v22 = vpack.c.bf16 %v1081_v21, %v1080_v20  ;;  %v1085_v26 = vld [vmem:[%s1746_s10 + $0x38] sm:$0xff] }
 0x379   :  { %1416 = vmatprep.subr.bf16.mxu0 %v1415_v19 }
 0x43e   :  { %v311_v27 = vpop.f32.mrb[4].mxu1 }
 0x43f   :  { %v1319_v28 = vpop.f32.mrb[5].mxu1 }
 0x440   :  { %v1247_v28 = vld [vmem:[%s1747_s9] ss:$0 sm:$0xff] }
 0x442   :  { %v478_v29 = vpop.f32.mrb[6].mxu1 }
 0x443   :  { %483 = vrot.lane.b32.xlu0 %v478_v29, %s1474_s22  ;;  %v1329_v30 = vpop.f32.mrb[7].mxu1 }
 0x446   :  { %v653_v31 = vpop.f32.mrb[8].mxu1 }
 0x447   :  { %v1339_v32 = vpop.f32.mrb[9].mxu1 }
 0x44a   :  { %v820_v33 = vpop.f32.mrb[10].mxu1 }
 0x44b   :  { %825 = vrot.lane.b32.xlu1 %v820_v33, %s1474_s22  ;;  %v1349_v34 = vpop.f32.mrb[11].mxu1 }
 0x4b5   :  { %v484_v35 = vpop.permute.xlu0 %483 }
 0x4b6   :  { %v486_v36 = vsel %vm146_vm2, %v311_v27, %v484_v35  ;;  %v1427_v27 = vpack.c.bf16 %v1085_v26, %v1084_v8 }
 0x4b7   :  { %1358 = vmatprep.mubr.msk.f32.mxu0 %vm60_vm0, %v486_v36 }
 0x4bd   :  { %v826_v37 = vpop.permute.xlu1 %825 }
 0x4be   :  { %v828_v38 = vsel %vm146_vm2, %v653_v31, %v826_v37 }
 0x4bf   :  { %1359 = vmatmul.mubr.msk.f32.vlgmr.msra.gmra.mrb[6].mxu0 %vm60_vm0, %v828_v38 }
 0x4c0   :  { %1418 = vmatpush3.bf16.msra.mxu0 %v1415_v19 }
 0x4c1   :  { %1420 = vmatprep.subr.bf16.mxu0 %v1419_v22 }
 0x4c4   :  { %1422 = vmatpush3.bf16.msra.mxu0 %v1419_v22 }
 0x4c5   :  { %1424 = vmatprep.subr.bf16.mxu0 %v1423_v25 }
 0x4c8   :  { %1426 = vmatpush3.bf16.msra.mxu0 %v1423_v25 }
 0x4c9   :  { %1428 = vmatprep.subr.bf16.mxu0 %v1427_v27 }
 0x4cc   :  { %1430 = vmatpush3.bf16.msra.mxu0 %v1427_v27 }
 0x592   :  { %v1360_v40 = vpop.f32.mrb[6].mxu0 }
 0x593   :  { %v918_v41 = vadd.f32 %v1360_v40, %v1242_v39  ;;  %v912_v42 = vpop.f32.mrb[7].mxu0 }
 0x594   :  { %v913_v43 = vadd.f32 %v1242_v39, %v912_v42 }
 0x595   :  { %v922_v44 = vadd.f32 %v918_v41, %v1572_v7 }
 0x596   :  { %v921_v45 = vadd.f32 %v913_v43, %v1565_v5  ;;  %v968_v5 = vld [vmem:[%s1743_s8] sm:$0xff] }
 0x597   :  { %v928_v46 = vsel %vm60_vm0, %v922_v44, 0.0  ;;  %v1407_v58 = vpack.c.bf16 %v969_v57, %v968_v5 }
 0x598   :  { %929 = vadd.xlane.f32.xlu1 %v928_v46  ;;  %v925_v47 = vsel %vm60_vm0, %v921_v45, 0.0 }
 0x599   :  { %926 = vadd.xlane.f32.xlu0 %v925_v47  ;;  %1408 = vmatprep.subr.bf16.mxu1 %v1407_v58 }
 0x59a   :  { %1410 = vmatpush3.bf16.msra.mxu1 %v1407_v58 }
 0x59b   :  { %1412 = vmatprep.subr.bf16.mxu1 %v1411_v61 }
 0x59e   :  { %1414 = vmatpush3.bf16.msra.mxu1 %v1411_v61 }
 0x625   :  { %v930_v48 = vpop.xlane.xlu1 %929 }
 0x626   :  { %v933_v49 = vmul.f32 0.03125, %v930_v48  ;;  %v927_v50 = vpop.xlane.xlu0 %926 }
 0x627   :  { %v932_v51 = vmul.f32 0.03125, %v927_v50 }
 0x628   :  { %v935_v52 = vsub.f32 %v922_v44, %v933_v49 }
 0x629   :  { %v934_v53 = vsub.f32 %v921_v45, %v932_v51  ;;  %v1250_v51 = vld [vmem:[%s1748_s11] ss:$0 sm:$0xff] }
 0x62a   :  { %v937_v56 = vmul.f32 %v935_v52, %v935_v52 }
 0x62b   :  { %v936_v54 = vmul.f32 %v934_v53, %v934_v53 }
 0x62c   :  { %v941_v7 = vsel %vm60_vm0, %v937_v56, 0.0 }
 0x62d   :  { %v938_v55 = vsel %vm60_vm0, %v936_v54, 0.0 }
 0x62e   :  { %939 = vadd.xlane.f32.xlu0 %v938_v55 }
 0x632   :  { %942 = vadd.xlane.f32.xlu0 %v941_v7 }
 0x6bb   :  { %v940_v62 = vpop.xlane.xlu0 %939 }
 0x6bc   :  { %v944_v63 = vmul.f32 0.03125, %v940_v62 }
 0x6be   :  { %v946_v0 = vadd.f32 1e-05, %v944_v63 }
 0x6bf   :  { %v943_v1 = vpop.xlane.xlu0 %942 }
 0x6c0   :  { %1455 = vrsqrt.f32 %v946_v0  ;;  %v945_v2 = vmul.f32 0.03125, %v943_v1 }
 0x6c2   :  { %v947_v3 = vadd.f32 1e-05, %v945_v2 }
 0x6c4   :  { %1457 = vrsqrt.f32 %v947_v3 }
 0x6ca   :  { %v1456_v4 = vpop.eup %1455 }
 0x6cb   :  { %v950_v9 = vmul.f32 %v1456_v4, %v934_v53 }
 0x6cd   :  { %v958_v11 = vmul.f32 %v1245_v6, %v950_v9 }
 0x6ce   :  { %v1458_v14 = vpop.eup %1457 }
 0x6cf   :  { %v951_v15 = vmul.f32 %v1458_v14, %v935_v52  ;;  %v966_v16 = vadd.f32 %v1246_v10, %v958_v11 }
 0x6d1   :  { %v959_v13 = vmul.f32 %v1245_v6, %v951_v15  ;;  %1369 = vmatprep.mubr.msk.f32.mxu1 %vm60_vm0, %v966_v16 }
 0x6d3   :  { %v967_v17 = vadd.f32 %v1246_v10, %v959_v13 }
 0x6d5   :  { %1370 = vmatmul.mubr.msk.f32.vlgmr.msra.gmra.mrb[12].mxu1 %vm60_vm0, %v967_v17 }
 0x7a8   :  { %v1371_v29 = vpop.f32.mrb[12].mxu1 }
 0x7a9   :  { %v1057_v30 = vadd.f32 %v1371_v29, %v1247_v28  ;;  %v1051_v31 = vpop.f32.mrb[13].mxu1 }
 0x7aa   :  { %v1052_v32 = vadd.f32 %v1247_v28, %v1051_v31 }
 0x7ab   :  { %v1061_v33 = vmul.f32 %v1057_v30, %v1057_v30 }
 0x7ac   :  { %v1060_v34 = vmul.f32 %v1052_v32, %v1052_v32 }
 0x7ad   :  { %v1063_v35 = vmul.f32 %v1061_v33, %v1057_v30 }
 0x7ae   :  { %v1062_v36 = vmul.f32 %v1060_v34, %v1052_v32 }
 0x7af   :  { %v1065_v37 = vmul.f32 0.044715, %v1063_v35 }
 0x7b0   :  { %v1064_v38 = vmul.f32 0.044715, %v1062_v36 }
 0x7b1   :  { %v1067_v39 = vadd.f32 %v1065_v37, %v1057_v30 }
 0x7b2   :  { %v1066_v40 = vadd.f32 %v1064_v38, %v1052_v32 }
 0x7b3   :  { %v1069_v41 = vmul.f32 0.7978846, %v1067_v39 }
 0x7b4   :  { %v1068_v42 = vmul.f32 0.7978846, %v1066_v40 }
 0x7b5   :  { %1459 = vtanh.f32 %v1069_v41 }
 0x7b6   :  { %1461 = vtanh.f32 %v1068_v42 }
 0x7bf   :  { %v1460_v43 = vpop.eup %1459 }
 0x7c0   :  { %v1462_v44 = vpop.eup %1461  ;;  %v1073_v45 = vadd.f32 1.0, %v1460_v43 }
 0x7c1   :  { %v1072_v46 = vadd.f32 1.0, %v1462_v44 }
 0x7c2   :  { %v1075_v47 = vmul.f32 0.5, %v1073_v45 }
 0x7c3   :  { %v1074_v48 = vmul.f32 0.5, %v1072_v46 }
 0x7c4   :  { %v1077_v50 = vmul.f32 %v1075_v47, %v1057_v30 }
 0x7c5   :  { %v1076_v49 = vmul.f32 %v1074_v48, %v1052_v32 }
 0x7c7   :  { %1388 = vmatprep.mubr.msk.f32.mxu0 %vm1093_vm4, %v1076_v49 }
 0x7c8   :  { %1389 = vmatmul.mubr.msk.f32.vlgmr.msra.gmra.mrb[8].mxu0 %vm1093_vm4, %v1077_v50 }
 0x89b   :  { %v1390_v52 = vpop.f32.mrb[8].mxu0 }
 0x89c   :  { %v1172_v53 = vadd.f32 %v1390_v52, %v1250_v51  ;;  %v1166_v54 = vpop.f32.mrb[9].mxu0 }
 0x89d   :  { %v1167_v55 = vadd.f32 %v1250_v51, %v1166_v54 }
 0x89e   :  { %v1176_v56 = vadd.f32 %v1172_v53, %v967_v17 }
 0x89f   :  { %v1175_v7 = vadd.f32 %v1167_v55, %v966_v16  ;;  %v1253_v16 = vld [vmem:[%s1749_s12] ss:$0 sm:$0xff] }
 0x8a0   :  { %v1182_v5 = vsel %vm60_vm0, %v1176_v56, 0.0 }
 0x8a1   :  { %1183 = vadd.xlane.f32.xlu0 %v1182_v5  ;;  %v1179_v57 = vsel %vm60_vm0, %v1175_v7, 0.0 }
 0x8a2   :  { %1180 = vadd.xlane.f32.xlu1 %v1179_v57 }
 0x92e   :  { %v1184_v58 = vpop.xlane.xlu0 %1183 }
 0x92f   :  { %v1186_v59 = vmul.f32 0.03125, %v1184_v58  ;;  %v1181_v60 = vpop.xlane.xlu1 %1180 }
 0x930   :  { %v1185_v61 = vmul.f32 0.03125, %v1181_v60 }
 0x931   :  { %v1188_v62 = vsub.f32 %v1176_v56, %v1186_v59 }
 0x932   :  { %v1187_v63 = vsub.f32 %v1175_v7, %v1185_v61 }
 0x933   :  { %v1190_v0 = vmul.f32 %v1188_v62, %v1188_v62 }
 0x934   :  { %v1189_v1 = vmul.f32 %v1187_v63, %v1187_v63 }
 0x935   :  { %v1194_v2 = vsel %vm60_vm0, %v1190_v0, 0.0 }
 0x936   :  { %1195 = vadd.xlane.f32.xlu0 %v1194_v2  ;;  %v1191_v3 = vsel %vm60_vm0, %v1189_v1, 0.0 }
 0x937   :  { %1192 = vadd.xlane.f32.xlu1 %v1191_v3 }
 0x9c3   :  { %v1196_v4 = vpop.xlane.xlu0 %1195 }
 0x9c4   :  { %v1198_v6 = vmul.f32 0.03125, %v1196_v4  ;;  %v1193_v9 = vpop.xlane.xlu1 %1192 }
 0x9c5   :  { %v1197_v10 = vmul.f32 0.03125, %v1193_v9 }
 0x9c6   :  { %v1200_v11 = vadd.f32 1e-05, %v1198_v6 }
 0x9c7   :  { %v1199_v14 = vadd.f32 1e-05, %v1197_v10 }
 0x9c8   :  { %1463 = vrsqrt.f32 %v1200_v11 }
 0x9c9   :  { %1465 = vrsqrt.f32 %v1199_v14 }
 0x9d2   :  { %v1464_v15 = vpop.eup %1463 }
 0x9d3   :  { %v1466_v13 = vpop.eup %1465  ;;  %v1204_v17 = vmul.f32 %v1464_v15, %v1188_v62 }
 0x9d4   :  { %v1203_v18 = vmul.f32 %v1466_v13, %v1187_v63 }
 0x9d5   :  { %v1212_v19 = vmul.f32 %v1253_v16, %v1204_v17 }
 0x9d6   :  { %v1211_v20 = vmul.f32 %v1253_v16, %v1203_v18 }
 0x9d7   :  { %v1220_v21 = vadd.f32 %v1254_v12, %v1212_v19 }
 0x9d8   :  { %v1219_v22 = vadd.f32 %v1254_v12, %v1211_v20 }
 0x9d9   :  { %1222 = vst.msk [vmem:[%s1751_s14 + $0x8] sm:$0xff] %vm60_vm0, %v1220_v21 }
 0x9da   :  { %1221 = vst.msk [vmem:[%s1751_s14] sm:$0xff] %vm60_vm0, %v1219_v22 }

// kernel: phobert_lstm_forward.7
= control target key start
LH: loop header
LB: loop body
LE: loop exit
PB: predicated region body
PF: predicated region fallthrough
CT: control target
= control target key end

     0   :  { %v1686_v7 = vmov 0.0   ;;  %vm46_vm0 = vcmask 261120   ;;  %s2070_s0 = inlined_call_operand.vmem [shape: f32[16,32], index: 0, kind: input, shape index: {}]   ;;  %s2071_s1 = inlined_call_operand.vmem [shape: f32[32,256], index: 1, kind: input, shape index: {}]   ;;  %s2072_s2 = inlined_call_operand.vmem [shape: f32[1,256], index: 2, kind: input, shape index: {}]   ;;  %s2073_s3 = inlined_call_operand.vmem [shape: f32[64,256], index: 3, kind: input, shape index: {}]   ;;  %s2074_s4 = inlined_call_operand.vmem [shape: f32[64,3], index: 4, kind: input, shape index: {}]   ;;  %s2075_s5 = inlined_call_operand.vmem [shape: f32[1,3], index: 5, kind: input, shape index: {}]   ;;  %s2076_s6 = inlined_call_operand.hbm [shape: f32[2,3], index: 6, kind: output, shape index: {}]  }
   0x1   :  { %v27_v0 = vld [vmem:[%s2071_s1 + $0x8] sm:$0xff]  ;;  %v29_v1 = vld [vmem:[%s2071_s1 + $0x18] sm:$0xff]  ;;  %v26_v5 = vld [vmem:[%s2071_s1] sm:$0xff]  ;;  %117 = vmatprep.mubr.f32.mxu0 %v1686_v7  ;;  %217 = vmatprep.mubr.f32.mxu1 %v1686_v7 }
   0x2   :  { %v131_v2 = vld [vmem:[%s2073_s3 + $0x8] sm:$0xff]  ;;  %v1379_v3 = vpack.c.bf16 %v29_v1, %v27_v0  ;;  %v133_v4 = vld [vmem:[%s2073_s3 + $0x18] sm:$0xff]  ;;  %v28_v6 = vld [vmem:[%s2071_s1 + $0x10] sm:$0xff] }
   0x3   :  { %v1748_v8 = vpack.c.bf16 %v133_v4, %v131_v2  ;;  %v1381_v9 = vpack.c.bf16 %v28_v6, %v26_v5  ;;  %v130_v10 = vld [vmem:[%s2073_s3] sm:$0xff]  ;;  %v132_v11 = vld [vmem:[%s2073_s3 + $0x10] sm:$0xff]  ;;  %v31_v12 = vld [vmem:[%s2071_s1 + $0x28] sm:$0xff] }
   0x4   :  { %1380 = vmatprep.subr.bf16.mxu0 %v1379_v3  ;;  %v1759_v13 = vpack.c.bf16 %v132_v11, %v130_v10  ;;  %v33_v14 = vld [vmem:[%s2071_s1 + $0x38] sm:$0xff]  ;;  %v135_v15 = vld [vmem:[%s2073_s3 + $0x28] sm:$0xff]  ;;  %v30_v19 = vld [vmem:[%s2071_s1 + $0x20] sm:$0xff] }
   0x5   :  { %v137_v16 = vld [vmem:[%s2073_s3 + $0x38] sm:$0xff]  ;;  %1388 = vmatprep.subr.bf16.mxu1 %v1748_v8  ;;  %1382 = vmatpush1.bf16.msra.mxu0 %v1381_v9  ;;  %v1383_v17 = vpack.c.bf16 %v33_v14, %v31_v12  ;;  %v32_v20 = vld [vmem:[%s2071_s1 + $0x30] sm:$0xff]  ;;  %v134_v21 = vld [vmem:[%s2073_s3 + $0x20] sm:$0xff] }
   0x6   :  { %v1771_v18 = vpack.c.bf16 %v137_v16, %v135_v15  ;;  %1390 = vmatpush1.bf16.msra.mxu1 %v1759_v13  ;;  %v1385_v22 = vpack.c.bf16 %v32_v20, %v30_v19  ;;  %v136_v23 = vld [vmem:[%s2073_s3 + $0x30] sm:$0xff]  ;;  %v139_v24 = vld [vmem:[%s2073_s3 + $0x48] sm:$0xff]  ;;  %v141_v26 = vld [vmem:[%s2073_s3 + $0x58] sm:$0xff] }
   0x7   :  { %1384 = vmatprep.subr.bf16.mxu0 %v1383_v17  ;;  %v1790_v25 = vpack.c.bf16 %v136_v23, %v134_v21  ;;  %v138_v27 = vld [vmem:[%s2073_s3 + $0x40] sm:$0xff]  ;;  %v140_v28 = vld [vmem:[%s2073_s3 + $0x50] sm:$0xff]  ;;  %v1801_v29 = vpack.c.bf16 %v141_v26, %v139_v24  ;;  %v143_v30 = vld [vmem:[%s2073_s3 + $0x68] sm:$0xff] }
   0x8   :  { %1392 = vmatprep.subr.bf16.mxu1 %v1771_v18  ;;  %v145_v31 = vld [vmem:[%s2073_s3 + $0x78] sm:$0xff]  ;;  %v24_v32 = vld [vmem:[%s2070_s0] sm:$0xff]  ;;  %v1813_v33 = vpack.c.bf16 %v140_v28, %v138_v27 }
   0x9   :  { %1386 = vmatpush1.bf16.msra.mxu0 %v1385_v22 }
   0xa   :  { %1394 = vmatpush1.bf16.msra.mxu1 %v1790_v25  ;;  %1404 = vmatprep.subr.bf16.mxu0 %v1748_v8 }
   0xb   :  { %11 = vsyncpa [#allocation3], 0  ;;  %1396 = vmatprep.subr.bf16.mxu1 %v1801_v29  ;;  %v1817_v34 = vpack.c.bf16 %v145_v31, %v143_v30  ;;  %v142_v35 = vld [vmem:[%s2073_s3 + $0x60] sm:$0xff]  ;;  %v144_v36 = vld [vmem:[%s2073_s3 + $0x70] sm:$0xff]  ;;  %v36_v39 = vlaneseq  ;;  %s1688_s24 = smov 32   ;;  %s1689_s25 = smov 96  }
   0xc   :  { %1316 = vmatmul.mubr.msk.f32.vlgmr.msra.gmra.mrb[0].mxu0 %vm46_vm0, %v24_v32  ;;  %v25_v37 = vld [vmem:[%s2070_s0 + $0x8] sm:$0xff]  ;;  %v1832_v38 = vpack.c.bf16 %v144_v36, %v142_v35  ;;  %v34_v42 = vld [vmem:[%s2072_s2] sm:$0x3]  ;;  %s1687_s2 = smov 64   ;;  %vm149_vm1 = vcmask 523264   ;;  %vm1691_vm2 = vmmov 0  }
   0xd   :  { %123 = vmatprep.mubr.f32.mxu0 %v1686_v7  ;;  %1406 = vmatpush1.bf16.msra.mxu0 %v1759_v13  ;;  %v37_v40 = vshrl.u32 %v36_v39, 7  ;;  %s1692_s18 = smov [#allocation2]   ;;  %vm1300_vm3 = vcmask 17408  }
   0xe   :  { %1398 = vmatpush1.bf16.msra.mxu1 %v1813_v33  ;;  %1408 = vmatprep.subr.bf16.mxu0 %v1771_v18  ;;  %s1308_s19 = sshll.u32 %s1692_s18, 4  ;;  %s1309_s19 = int_to_ptr.vmem [resolvable:$true] %s1308_s19 }
   0xf   :  { %1400 = vmatprep.subr.bf16.mxu1 %v1817_v34  ;;  %v42_v41 = vsub.s32 1, %v37_v40  ;;  %v38_v44 = vsub.s32 0, %v37_v40  ;;  %s1662_s20 = scalar_lea.vmem %s1309_s19, 32  ;;  %p1667_p1 = scmp.lt.s32.totalorder %s1309_s19, %s1309_s19 }
  0x10   :  { %1317 = vmatmul.mubr.msk.f32.gmra.mrb[2].mxu0 %vm46_vm0, %v25_v37  ;;  %p1663_p0 = scmp.ne.s32.totalorder %s1309_s19, %s1662_s20  ;;  %p1668_p2 = scmp.lt.s32.totalorder %s1662_s20, %s1662_s20 }
  0x11   :  { %1410 = vmatpush1.bf16.msra.mxu0 %v1790_v25  ;;  %343 = vmatprep.mubr.f32.mxu0 %v1686_v7  ;;  %v43_v43 = vrot.slane %v34_v42, %v42_v41  ;;  %v39_v48 = vrot.slane %v34_v42, %v38_v44 }
  0x12   :  { %1402 = vmatpush1.bf16.msra.mxu1 %v1832_v38  ;;  %1412 = vmatprep.subr.bf16.mxu0 %v1801_v29  ;;  %p1669_p3 = por %p1668_p2, %p1667_p1 }
  0x13   :  { %1420 = vmatprep.subr.bf16.mxu1 %v1748_v8 }
  0x14   :  { %p1670_p4 = pnand %p1669_p3, %p1663_p0 }
  0x15   :  { %218 = vmatmul.mubr.f32.vlgmr.msra.gmra.mrb[0].mxu1 %v1686_v7  ;;  %1414 = vmatpush1.bf16.msra.mxu0 %v1813_v33 }
  0x16   :  { %1416 = vmatprep.subr.bf16.mxu0 %v1817_v34  ;;  %1422 = vmatpush1.bf16.msra.mxu1 %v1759_v13 }
  0x17   :  { %1424 = vmatprep.subr.bf16.mxu1 %v1771_v18  ;;  %477 = vmatprep.mubr.f32.mxu1 %v1686_v7 }
  0x19   :  { %1418 = vmatpush1.bf16.msra.mxu0 %v1832_v38 }
  0x1a   :  { %1426 = vmatpush1.bf16.msra.mxu1 %v1790_v25  ;;  %1436 = vmatprep.subr.bf16.mxu0 %v1748_v8 }
  0x1b   :  { %1428 = vmatprep.subr.bf16.mxu1 %v1801_v29 }
  0x1e   :  { %1430 = vmatpush1.bf16.msra.mxu1 %v1813_v33 }
  0x1f   :  { %1432 = vmatprep.subr.bf16.mxu1 %v1817_v34 }
  0x22   :  { %1434 = vmatpush1.bf16.msra.mxu1 %v1832_v38 }
  0x23   :  { %1452 = vmatprep.subr.bf16.mxu1 %v1748_v8 }
  0xdf   :  { %v119_v45 = vpop.f32.mrb[0].mxu0 }
  0xe0   :  { %v121_v46 = vpop.f32.mrb[1].mxu0  ;;  %v1865_v53 = vadd.f32 %v119_v45, %v39_v48 }
  0xe1   :  { %v1859_v47 = vadd.f32 %v121_v46, %v43_v43 }
  0xe3   :  { %v125_v49 = vpop.f32.mrb[2].mxu0 }
  0xe4   :  { %v1861_v50 = vadd.f32 %v125_v49, %v39_v48  ;;  %v127_v51 = vpop.f32.mrb[3].mxu0 }
  0xe5   :  { %v1863_v52 = vadd.f32 %v127_v51, %v43_v43 }
  0xe7   :  { %v147_v54 = vrot.slane %v1863_v52, 6  ;;  %v274_v32 = vrot.slane %v1863_v52, 2 }
  0xe8   :  { %v219_v55 = vpop.f32.mrb[0].mxu1 }
  0xe9   :  { %v224_v56 = vadd.f32 %v219_v55, %v1865_v53  ;;  %v221_v57 = vpop.f32.mrb[1].mxu1 }
  0xea   :  { %v225_v58 = vadd.f32 %v221_v57, %v147_v54 }
  0xeb   :  { %248 = vrot.lane.b32.xlu1 %v224_v56, %s1687_s2 }
  0xec   :  { %227 = vrot.lane.b32.xlu0 %v225_v58, %s1688_s24 }
  0xef   :  { %251 = vrot.lane.b32.xlu1 %v225_v58, %s1689_s25 }
  0xf0   :  { %238 = vrot.lane.b32.xlu0 %v224_v56, %s1689_s25 }
  0xf3   :  { %259 = vrot.lane.b32.xlu1 %v225_v58, %s1687_s2 }
  0xf4   :  { %256 = vrot.lane.b32.xlu0 %v224_v56, %s1688_s24 }
 0x15d   :  { %v249_v59 = vpop.permute.xlu1 %248 }
 0x15e   :  { %v228_v60 = vpop.permute.xlu0 %227 }
 0x15f   :  { %v230_v61 = vsel %vm46_vm0, %v224_v56, %v228_v60 }
 0x160   :  { %v1318_v62 = vmul.f32 -1.442695, %v230_v61 }
 0x161   :  { %v252_v63 = vpop.permute.xlu1 %251 }
 0x162   :  { %1534 = vpow2.f32 %v1318_v62  ;;  %v239_v0 = vpop.permute.xlu0 %238  ;;  %v254_v11 = vsel %vm46_vm0, %v249_v59, %v252_v63 }
 0x163   :  { %v241_v1 = vsel %vm46_vm0, %v239_v0, %v225_v58 }
 0x164   :  { %v1319_v2 = vmul.f32 -1.442695, %v241_v1 }
 0x165   :  { %v260_v3 = vpop.permute.xlu1 %259 }
 0x166   :  { %1536 = vpow2.f32 %v1319_v2  ;;  %v257_v4 = vpop.permute.xlu0 %256 }
 0x167   :  { %v262_v5 = vsel %vm46_vm0, %v257_v4, %v260_v3 }
 0x168   :  { %v1320_v9 = vmul.f32 -1.442695, %v262_v5 }
 0x16a   :  { %1538 = vpow2.f32 %v1320_v9 }
 0x16c   :  { %v1535_v6 = vpop.eup %1534 }
 0x16d   :  { %v234_v10 = vadd.f32 1.0, %v1535_v6 }
 0x16f   :  { %1540 = vrcp.f32 %v234_v10 }
 0x170   :  { %v1537_v12 = vpop.eup %1536  ;;  %1542 = vtanh.f32 %v254_v11 }
 0x171   :  { %v245_v14 = vadd.f32 1.0, %v1537_v12 }
 0x173   :  { %1544 = vrcp.f32 %v245_v14 }
 0x174   :  { %v1539_v15 = vpop.eup %1538 }
 0x175   :  { %v266_v20 = vadd.f32 1.0, %v1539_v15 }
 0x177   :  { %1546 = vrcp.f32 %v266_v20 }
 0x179   :  { %v1541_v16 = vpop.eup %1540 }
 0x17a   :  { %v1543_v17 = vpop.eup %1542 }
 0x17b   :  { %v270_v22 = vmul.f32 %v1543_v17, %v1541_v16 }
 0x17d   :  { %v1545_v19 = vpop.eup %1544 }
 0x17e   :  { %v269_v21 = vmul.f32 0.0, %v1545_v19 }
 0x180   :  { %v271_v23 = vadd.f32 %v270_v22, %v269_v21 }
 0x181   :  { %v1547_v24 = vpop.eup %1546 }
 0x182   :  { %1548 = vtanh.f32 %v271_v23  ;;  %v402_v63 = vrot.slane %v271_v23, 6 }
 0x18c   :  { %v1549_v26 = vpop.eup %1548 }
 0x18d   :  { %v273_v27 = vmul.f32 %v1549_v26, %v1547_v24 }
 0x18f   :  { %1321 = vmatmul.mubr.msk.f32.vlgmr.msra.gmra.mrb[4].mxu0 %vm149_vm1, %v273_v27 }
 0x190   :  { %1438 = vmatpush1.bf16.msra.mxu0 %v1759_v13  ;;  %611 = vmatprep.mubr.f32.mxu0 %v1686_v7 }
 0x191   :  { %1440 = vmatprep.subr.bf16.mxu0 %v1771_v18 }
 0x194   :  { %1442 = vmatpush1.bf16.msra.mxu0 %v1790_v25 }
 0x195   :  { %1444 = vmatprep.subr.bf16.mxu0 %v1801_v29 }
 0x198   :  { %1446 = vmatpush1.bf16.msra.mxu0 %v1813_v33 }
 0x199   :  { %1448 = vmatprep.subr.bf16.mxu0 %v1817_v34 }
 0x19c   :  { %1450 = vmatpush1.bf16.msra.mxu0 %v1832_v38 }
 0x19d   :  { %1468 = vmatprep.subr.bf16.mxu0 %v1748_v8 }
 0x262   :  { %v345_v28 = vpop.f32.mrb[4].mxu0 }
 0x263   :  { %v352_v30 = vrot.slane %v345_v28, 6  ;;  %v347_v31 = vpop.f32.mrb[5].mxu0 }
 0x264   :  { %v353_v35 = vrot.slane %v347_v31, 6 }
 0x265   :  { %v356_v36 = vadd.f32 %v352_v30, %v1865_v53 }
 0x266   :  { %v357_v37 = vadd.f32 %v353_v35, %v274_v32 }
 0x267   :  { %370 = vrot.lane.b32.xlu1 %v356_v36, %s1689_s25 }
 0x268   :  { %359 = vrot.lane.b32.xlu0 %v357_v37, %s1688_s24 }
 0x26b   :  { %383 = vrot.lane.b32.xlu1 %v357_v37, %s1689_s25 }
 0x26c   :  { %380 = vrot.lane.b32.xlu0 %v356_v36, %s1687_s2 }
 0x26f   :  { %391 = vrot.lane.b32.xlu1 %v357_v37, %s1687_s2 }
 0x270   :  { %388 = vrot.lane.b32.xlu0 %v356_v36, %s1688_s24 }
 0x2d9   :  { %v371_v39 = vpop.permute.xlu1 %370 }
 0x2da   :  { %v373_v40 = vsel %vm46_vm0, %v371_v39, %v357_v37  ;;  %v360_v41 = vpop.permute.xlu0 %359 }
 0x2db   :  { %v1323_v42 = vmul.f32 -1.442695, %v373_v40  ;;  %v362_v43 = vsel %vm46_vm0, %v356_v36, %v360_v41 }
 0x2dc   :  { %v1322_v44 = vmul.f32 -1.442695, %v362_v43 }
 0x2dd   :  { %1550 = vpow2.f32 %v1323_v42  ;;  %v384_v45 = vpop.permute.xlu1 %383 }
 0x2de   :  { %1552 = vpow2.f32 %v1322_v44  ;;  %v381_v46 = vpop.permute.xlu0 %380 }
 0x2df   :  { %v386_v56 = vsel %vm46_vm0, %v381_v46, %v384_v45 }
 0x2e1   :  { %v392_v48 = vpop.permute.xlu1 %391 }
 0x2e2   :  { %v389_v49 = vpop.permute.xlu0 %388 }
 0x2e3   :  { %v394_v51 = vsel %vm46_vm0, %v389_v49, %v392_v48 }
 0x2e4   :  { %v1324_v55 = vmul.f32 -1.442695, %v394_v51 }
 0x2e6   :  { %1554 = vpow2.f32 %v1324_v55 }
 0x2e7   :  { %v1551_v57 = vpop.eup %1550  ;;  %1556 = vtanh.f32 %v386_v56 }
 0x2e8   :  { %v1553_v58 = vpop.eup %1552  ;;  %v377_v59 = vadd.f32 1.0, %v1551_v57 }
 0x2e9   :  { %v366_v60 = vadd.f32 1.0, %v1553_v58 }
 0x2ea   :  { %1558 = vrcp.f32 %v377_v59 }
 0x2eb   :  { %1560 = vrcp.f32 %v366_v60 }
 0x2f0   :  { %v1555_v61 = vpop.eup %1554 }
 0x2f1   :  { %v1557_v62 = vpop.eup %1556  ;;  %v398_v3 = vadd.f32 1.0, %v1555_v61 }
 0x2f3   :  { %1562 = vrcp.f32 %v398_v3 }
 0x2f4   :  { %v1559_v0 = vpop.eup %1558 }
 0x2f5   :  { %v1561_v1 = vpop.eup %1560  ;;  %v404_v2 = vmul.f32 %v1559_v0, %v402_v63 }
 0x2f6   :  { %v405_v4 = vmul.f32 %v1561_v1, %v1557_v62 }
 0x2f8   :  { %v406_v5 = vadd.f32 %v405_v4, %v404_v2 }
 0x2fa   :  { %1564 = vtanh.f32 %v406_v5  ;;  %v536_v44 = vrot.slane %v406_v5, 6 }
 0x2fd   :  { %v1563_v6 = vpop.eup %1562 }
 0x304   :  { %v1565_v9 = vpop.eup %1564 }
 0x305   :  { %v408_v10 = vmul.f32 %v1565_v9, %v1563_v6 }
 0x307   :  { %v410_v11 = vrot.slane %v408_v10, 2 }
 0x309   :  { %1325 = vmatmul.mubr.msk.f32.vlgmr.msra.gmra.mrb[2].mxu1 %vm149_vm1, %v410_v11 }
 0x30a   :  { %1454 = vmatpush1.bf16.msra.mxu1 %v1759_v13  ;;  %748 = vmatprep.mubr.f32.mxu1 %v1686_v7 }
 0x30b   :  { %1456 = vmatprep.subr.bf16.mxu1 %v1771_v18 }
 0x30e   :  { %1458 = vmatpush1.bf16.msra.mxu1 %v1790_v25 }
 0x30f   :  { %1460 = vmatprep.subr.bf16.mxu1 %v1801_v29 }
 0x312   :  { %1462 = vmatpush1.bf16.msra.mxu1 %v1813_v33 }
 0x313   :  { %1464 = vmatprep.subr.bf16.mxu1 %v1817_v34 }
 0x316   :  { %1466 = vmatpush1.bf16.msra.mxu1 %v1832_v38 }
 0x317   :  { %1484 = vmatprep.subr.bf16.mxu1 %v1748_v8 }
 0x3dc   :  { %v479_v12 = vpop.f32.mrb[2].mxu1 }
 0x3dd   :  { %v486_v14 = vrot.slane %v479_v12, 4  ;;  %v481_v15 = vpop.f32.mrb[3].mxu1 }
 0x3de   :  { %v487_v16 = vrot.slane %v481_v15, 4 }
 0x3df   :  { %v490_v17 = vadd.f32 %v486_v14, %v1865_v53 }
 0x3e0   :  { %v491_v19 = vadd.f32 %v487_v16, %v147_v54 }
 0x3e1   :  { %504 = vrot.lane.b32.xlu1 %v490_v17, %s1689_s25 }
 0x3e2   :  { %493 = vrot.lane.b32.xlu0 %v491_v19, %s1688_s24 }
 0x3e5   :  { %517 = vrot.lane.b32.xlu1 %v491_v19, %s1689_s25 }
 0x3e6   :  { %514 = vrot.lane.b32.xlu0 %v490_v17, %s1687_s2 }
 0x3e9   :  { %525 = vrot.lane.b32.xlu1 %v491_v19, %s1687_s2 }
 0x3ea   :  { %522 = vrot.lane.b32.xlu0 %v490_v17, %s1688_s24 }
 0x453   :  { %v505_v20 = vpop.permute.xlu1 %504 }
 0x454   :  { %v507_v21 = vsel %vm46_vm0, %v505_v20, %v491_v19  ;;  %v494_v22 = vpop.permute.xlu0 %493 }
 0x455   :  { %v1327_v23 = vmul.f32 -1.442695, %v507_v21  ;;  %v496_v24 = vsel %vm46_vm0, %v490_v17, %v494_v22 }
 0x456   :  { %v1326_v54 = vmul.f32 -1.442695, %v496_v24 }
 0x457   :  { %1566 = vpow2.f32 %v1327_v23  ;;  %v518_v26 = vpop.permute.xlu1 %517 }
 0x458   :  { %1568 = vpow2.f32 %v1326_v54  ;;  %v515_v27 = vpop.permute.xlu0 %514 }
 0x459   :  { %v520_v36 = vsel %vm46_vm0, %v515_v27, %v518_v26 }
 0x45b   :  { %v526_v28 = vpop.permute.xlu1 %525 }
 0x45c   :  { %v523_v30 = vpop.permute.xlu0 %522 }
 0x45d   :  { %v528_v31 = vsel %vm46_vm0, %v523_v30, %v526_v28 }
 0x45e   :  { %v1328_v35 = vmul.f32 -1.442695, %v528_v31 }
 0x460   :  { %1570 = vpow2.f32 %v1328_v35 }
 0x461   :  { %v1567_v37 = vpop.eup %1566  ;;  %1572 = vtanh.f32 %v520_v36 }
 0x462   :  { %v1569_v39 = vpop.eup %1568  ;;  %v511_v40 = vadd.f32 1.0, %v1567_v37  ;;  %v678_v37 = vrot.slane %v1859_v47, 6 }
 0x463   :  { %v500_v41 = vadd.f32 1.0, %v1569_v39 }
 0x464   :  { %1574 = vrcp.f32 %v511_v40 }
 0x465   :  { %1576 = vrcp.f32 %v500_v41 }
 0x46a   :  { %v1571_v42 = vpop.eup %1570 }
 0x46b   :  { %v1573_v43 = vpop.eup %1572  ;;  %v532_v49 = vadd.f32 1.0, %v1571_v42 }
 0x46d   :  { %1578 = vrcp.f32 %v532_v49 }
 0x46e   :  { %v1575_v45 = vpop.eup %1574 }
 0x46f   :  { %v1577_v46 = vpop.eup %1576  ;;  %v538_v48 = vmul.f32 %v1575_v45, %v536_v44 }
 0x470   :  { %v539_v51 = vmul.f32 %v1577_v46, %v1573_v43 }
 0x472   :  { %v540_v55 = vadd.f32 %v539_v51, %v538_v48 }
 0x474   :  { %1580 = vtanh.f32 %v540_v55  ;;  %v670_v21 = vrot.slane %v540_v55, 6 }
 0x477   :  { %v1579_v56 = vpop.eup %1578 }
 0x47e   :  { %v1581_v57 = vpop.eup %1580 }
 0x47f   :  { %v542_v58 = vmul.f32 %v1581_v57, %v1579_v56 }
 0x481   :  { %v544_v59 = vrot.slane %v542_v58, 4 }
 0x483   :  { %1329 = vmatmul.mubr.msk.f32.vlgmr.msra.gmra.mrb[6].mxu0 %vm149_vm1, %v544_v59 }
 0x484   :  { %1470 = vmatpush1.bf16.msra.mxu0 %v1759_v13  ;;  %877 = vmatprep.mubr.f32.mxu0 %v1686_v7 }
 0x485   :  { %1472 = vmatprep.subr.bf16.mxu0 %v1771_v18 }
 0x488   :  { %1474 = vmatpush1.bf16.msra.mxu0 %v1790_v25 }
 0x489   :  { %1476 = vmatprep.subr.bf16.mxu0 %v1801_v29 }
 0x48c   :  { %1478 = vmatpush1.bf16.msra.mxu0 %v1813_v33 }
 0x48d   :  { %1480 = vmatprep.subr.bf16.mxu0 %v1817_v34 }
 0x490   :  { %1482 = vmatpush1.bf16.msra.mxu0 %v1832_v38 }
 0x491   :  { %1500 = vmatprep.subr.bf16.mxu0 %v1748_v8 }
 0x556   :  { %v613_v60 = vpop.f32.mrb[6].mxu0 }
 0x557   :  { %v620_v61 = vrot.slane %v613_v60, 2  ;;  %v615_v62 = vpop.f32.mrb[7].mxu0 }
 0x558   :  { %v621_v63 = vrot.slane %v615_v62, 2 }
 0x559   :  { %v624_v0 = vadd.f32 %v620_v61, %v1865_v53 }
 0x55a   :  { %v625_v1 = vadd.f32 %v621_v63, %v274_v32 }
 0x55b   :  { %638 = vrot.lane.b32.xlu1 %v624_v0, %s1689_s25 }
 0x55c   :  { %627 = vrot.lane.b32.xlu0 %v625_v1, %s1688_s24 }
 0x55f   :  { %651 = vrot.lane.b32.xlu1 %v625_v1, %s1689_s25 }
 0x560   :  { %648 = vrot.lane.b32.xlu0 %v624_v0, %s1687_s2 }
 0x563   :  { %659 = vrot.lane.b32.xlu1 %v625_v1, %s1687_s2 }
 0x564   :  { %656 = vrot.lane.b32.xlu0 %v624_v0, %s1688_s24 }
 0x5cd   :  { %v639_v8 = vpop.permute.xlu1 %638 }
 0x5ce   :  { %v641_v2 = vsel %vm46_vm0, %v639_v8, %v625_v1  ;;  %v628_v3 = vpop.permute.xlu0 %627 }
 0x5cf   :  { %v1331_v53 = vmul.f32 -1.442695, %v641_v2  ;;  %v630_v52 = vsel %vm46_vm0, %v624_v0, %v628_v3 }
 0x5d0   :  { %v1330_v32 = vmul.f32 -1.442695, %v630_v52 }
 0x5d1   :  { %1582 = vpow2.f32 %v1331_v53  ;;  %v652_v4 = vpop.permute.xlu1 %651 }
 0x5d2   :  { %1584 = vpow2.f32 %v1330_v32  ;;  %v649_v5 = vpop.permute.xlu0 %648 }
 0x5d3   :  { %v654_v12 = vsel %vm46_vm0, %v649_v5, %v652_v4 }
 0x5d5   :  { %v660_v6 = vpop.permute.xlu1 %659 }
 0x5d6   :  { %v657_v9 = vpop.permute.xlu0 %656 }
 0x5d7   :  { %v662_v10 = vsel %vm46_vm0, %v657_v9, %v660_v6 }
 0x5d8   :  { %v1332_v11 = vmul.f32 -1.442695, %v662_v10 }
 0x5da   :  { %1586 = vpow2.f32 %v1332_v11 }
 0x5db   :  { %v1583_v14 = vpop.eup %1582  ;;  %1588 = vtanh.f32 %v654_v12 }
 0x5dc   :  { %v1585_v15 = vpop.eup %1584  ;;  %v645_v16 = vadd.f32 1.0, %v1583_v14  ;;  %v808_v14 = vrot.slane %v1859_v47, 2  ;;  %v1212_v47 = vld [vmem:[%s2074_s4 + $0x8] sm:$0xff] }
 0x5dd   :  { %v634_v17 = vadd.f32 1.0, %v1585_v15 }
 0x5de   :  { %1590 = vrcp.f32 %v645_v16 }
 0x5df   :  { %1592 = vrcp.f32 %v634_v17 }
 0x5e4   :  { %v1587_v19 = vpop.eup %1586 }
 0x5e5   :  { %v1589_v20 = vpop.eup %1588  ;;  %v666_v54 = vadd.f32 1.0, %v1587_v19 }
 0x5e7   :  { %1594 = vrcp.f32 %v666_v54 }
 0x5e8   :  { %v1591_v22 = vpop.eup %1590 }
 0x5e9   :  { %v1593_v23 = vpop.eup %1592  ;;  %v672_v24 = vmul.f32 %v1591_v22, %v670_v21 }
 0x5ea   :  { %v673_v26 = vmul.f32 %v1593_v23, %v1589_v20 }
 0x5ec   :  { %v674_v27 = vadd.f32 %v673_v26, %v672_v24 }
 0x5ee   :  { %1596 = vtanh.f32 %v674_v27  ;;  %v801_v8 = vrot.slane %v674_v27, 6 }
 0x5f1   :  { %v1595_v28 = vpop.eup %1594 }
 0x5f8   :  { %v1597_v30 = vpop.eup %1596 }
 0x5f9   :  { %v676_v31 = vmul.f32 %v1597_v30, %v1595_v28 }
 0x5fb   :  { %v681_v35 = vrot.slane %v676_v31, 6 }
 0x5fd   :  { %1333 = vmatmul.mubr.msk.f32.vlgmr.msra.gmra.mrb[4].mxu1 %vm149_vm1, %v681_v35 }
 0x5fe   :  { %1486 = vmatpush1.bf16.msra.mxu1 %v1759_v13  ;;  %1011 = vmatprep.mubr.f32.mxu1 %v1686_v7 }
 0x5ff   :  { %1488 = vmatprep.subr.bf16.mxu1 %v1771_v18 }
 0x602   :  { %1490 = vmatpush1.bf16.msra.mxu1 %v1790_v25 }
 0x603   :  { %1492 = vmatprep.subr.bf16.mxu1 %v1801_v29 }
 0x606   :  { %1494 = vmatpush1.bf16.msra.mxu1 %v1813_v33 }
 0x607   :  { %1496 = vmatprep.subr.bf16.mxu1 %v1817_v34 }
 0x60a   :  { %1498 = vmatpush1.bf16.msra.mxu1 %v1832_v38 }
 0x6d0   :  { %v750_v36 = vpop.f32.mrb[4].mxu1 }
 0x6d1   :  { %v755_v39 = vadd.f32 %v750_v36, %v1861_v50  ;;  %v752_v40 = vpop.f32.mrb[5].mxu1 }
 0x6d2   :  { %v756_v41 = vadd.f32 %v752_v40, %v678_v37 }
 0x6d3   :  { %769 = vrot.lane.b32.xlu1 %v755_v39, %s1689_s25 }
 0x6d4   :  { %758 = vrot.lane.b32.xlu0 %v756_v41, %s1688_s24 }
 0x6d7   :  { %782 = vrot.lane.b32.xlu1 %v756_v41, %s1689_s25 }
 0x6d8   :  { %779 = vrot.lane.b32.xlu0 %v755_v39, %s1687_s2 }
 0x6db   :  { %790 = vrot.lane.b32.xlu1 %v756_v41, %s1687_s2 }
 0x6dc   :  { %787 = vrot.lane.b32.xlu0 %v755_v39, %s1688_s24 }
 0x745   :  { %v770_v42 = vpop.permute.xlu1 %769 }
 0x746   :  { %v772_v43 = vsel %vm46_vm0, %v770_v42, %v756_v41  ;;  %v759_v44 = vpop.permute.xlu0 %758 }
 0x747   :  { %v1335_v45 = vmul.f32 -1.442695, %v772_v43  ;;  %v761_v46 = vsel %vm46_vm0, %v755_v39, %v759_v44 }
 0x748   :  { %v1334_v48 = vmul.f32 -1.442695, %v761_v46 }
 0x749   :  { %1598 = vpow2.f32 %v1335_v45  ;;  %v783_v49 = vpop.permute.xlu1 %782 }
 0x74a   :  { %1600 = vpow2.f32 %v1334_v48  ;;  %v780_v51 = vpop.permute.xlu0 %779 }
 0x74b   :  { %v785_v59 = vsel %vm46_vm0, %v780_v51, %v783_v49 }
 0x74d   :  { %v791_v55 = vpop.permute.xlu1 %790 }
 0x74e   :  { %v788_v56 = vpop.permute.xlu0 %787 }
 0x74f   :  { %v793_v57 = vsel %vm46_vm0, %v788_v56, %v791_v55 }
 0x750   :  { %v1336_v58 = vmul.f32 -1.442695, %v793_v57 }
 0x752   :  { %1602 = vpow2.f32 %v1336_v58 }
 0x753   :  { %v1599_v60 = vpop.eup %1598  ;;  %1604 = vtanh.f32 %v785_v59 }
 0x754   :  { %v1601_v61 = vpop.eup %1600  ;;  %v776_v62 = vadd.f32 1.0, %v1599_v60 }
 0x755   :  { %v765_v63 = vadd.f32 1.0, %v1601_v61 }
 0x756   :  { %1606 = vrcp.f32 %v776_v62 }
 0x757   :  { %1608 = vrcp.f32 %v765_v63 }
 0x75c   :  { %v1603_v0 = vpop.eup %1602 }
 0x75d   :  { %v1605_v1 = vpop.eup %1604  ;;  %v797_v52 = vadd.f32 1.0, %v1603_v0 }
 0x75f   :  { %1610 = vrcp.f32 %v797_v52 }
 0x760   :  { %v1607_v2 = vpop.eup %1606 }
 0x761   :  { %v1609_v3 = vpop.eup %1608  ;;  %v803_v53 = vmul.f32 %v1607_v2, %v801_v8 }
 0x762   :  { %v804_v32 = vmul.f32 %v1609_v3, %v1605_v1 }
 0x764   :  { %v805_v4 = vadd.f32 %v804_v32, %v803_v53 }
 0x766   :  { %1612 = vtanh.f32 %v805_v4  ;;  %v936_v35 = vrot.slane %v805_v4, 6 }
 0x769   :  { %v1611_v5 = vpop.eup %1610 }
 0x770   :  { %v1613_v6 = vpop.eup %1612 }
 0x771   :  { %v807_v9 = vmul.f32 %v1613_v6, %v1611_v5 }
 0x773   :  { %1337 = vmatmul.mubr.msk.f32.vlgmr.msra.gmra.mrb[8].mxu0 %vm149_vm1, %v807_v9 }
 0x774   :  { %1502 = vmatpush1.bf16.msra.mxu0 %v1759_v13  ;;  %1145 = vmatprep.mubr.f32.mxu0 %v1686_v7 }
 0x775   :  { %1504 = vmatprep.subr.bf16.mxu0 %v1771_v18 }
 0x778   :  { %1506 = vmatpush1.bf16.msra.mxu0 %v1790_v25 }
 0x779   :  { %1508 = vmatprep.subr.bf16.mxu0 %v1801_v29 }
 0x77c   :  { %1510 = vmatpush1.bf16.msra.mxu0 %v1813_v33 }
 0x77d   :  { %1512 = vmatprep.subr.bf16.mxu0 %v1817_v34 }
 0x780   :  { %1514 = vmatpush1.bf16.msra.mxu0 %v1832_v38 }
 0x846   :  { %v879_v10 = vpop.f32.mrb[8].mxu0 }
 0x847   :  { %v886_v11 = vrot.slane %v879_v10, 6  ;;  %v881_v12 = vpop.f32.mrb[9].mxu0 }
 0x848   :  { %v887_v13 = vrot.slane %v881_v12, 6 }
 0x849   :  { %v890_v15 = vadd.f32 %v886_v11, %v1861_v50 }
 0x84a   :  { %v891_v18 = vadd.f32 %v887_v13, %v808_v14 }
 0x84b   :  { %904 = vrot.lane.b32.xlu1 %v890_v15, %s1689_s25 }
 0x84c   :  { %893 = vrot.lane.b32.xlu0 %v891_v18, %s1688_s24 }
 0x84f   :  { %917 = vrot.lane.b32.xlu1 %v891_v18, %s1689_s25 }
 0x850   :  { %914 = vrot.lane.b32.xlu0 %v890_v15, %s1687_s2 }
 0x853   :  { %925 = vrot.lane.b32.xlu1 %v891_v18, %s1687_s2 }
 0x854   :  { %922 = vrot.lane.b32.xlu0 %v890_v15, %s1688_s24 }
 0x8bd   :  { %v905_v25 = vpop.permute.xlu1 %904 }
 0x8be   :  { %v907_v29 = vsel %vm46_vm0, %v905_v25, %v891_v18  ;;  %v894_v33 = vpop.permute.xlu0 %893 }
 0x8bf   :  { %v1339_v34 = vmul.f32 -1.442695, %v907_v29  ;;  %v896_v38 = vsel %vm46_vm0, %v890_v15, %v894_v33 }
 0x8c0   :  { %v1338_v16 = vmul.f32 -1.442695, %v896_v38 }
 0x8c1   :  { %1614 = vpow2.f32 %v1339_v34  ;;  %v918_v17 = vpop.permute.xlu1 %917 }
 0x8c2   :  { %1616 = vpow2.f32 %v1338_v16  ;;  %v915_v19 = vpop.permute.xlu0 %914 }
 0x8c3   :  { %v920_v24 = vsel %vm46_vm0, %v915_v19, %v918_v17 }
 0x8c5   :  { %v926_v20 = vpop.permute.xlu1 %925 }
 0x8c6   :  { %v923_v21 = vpop.permute.xlu0 %922 }
 0x8c7   :  { %v928_v22 = vsel %vm46_vm0, %v923_v21, %v926_v20 }
 0x8c8   :  { %v1340_v23 = vmul.f32 -1.442695, %v928_v22 }
 0x8ca   :  { %1618 = vpow2.f32 %v1340_v23 }
 0x8cb   :  { %v1615_v54 = vpop.eup %1614  ;;  %1620 = vtanh.f32 %v920_v24  ;;  %v1211_v24 = vld [vmem:[%s2074_s4] sm:$0xff] }
 0x8cc   :  { %v1617_v26 = vpop.eup %1616  ;;  %v911_v27 = vadd.f32 1.0, %v1615_v54  ;;  %v1213_v54 = vld [vmem:[%s2074_s4 + $0x10] sm:$0xff] }
 0x8cd   :  { %v900_v28 = vadd.f32 1.0, %v1617_v26  ;;  %v1214_v26 = vld [vmem:[%s2074_s4 + $0x18] sm:$0xff] }
 0x8ce   :  { %1622 = vrcp.f32 %v911_v27  ;;  %v1519_v27 = vpack.c.bf16 %v1214_v26, %v1213_v54 }
 0x8cf   :  { %1624 = vrcp.f32 %v900_v28  ;;  %v1215_v28 = vld [vmem:[%s2074_s4 + $0x20] sm:$0xff] }
 0x8d4   :  { %v1619_v30 = vpop.eup %1618 }
 0x8d5   :  { %v1621_v31 = vpop.eup %1620  ;;  %v932_v41 = vadd.f32 1.0, %v1619_v30  ;;  %v1216_v30 = vld [vmem:[%s2074_s4 + $0x28] sm:$0xff] }
 0x8d7   :  { %1626 = vrcp.f32 %v932_v41 }
 0x8d8   :  { %v1623_v36 = vpop.eup %1622 }
 0x8d9   :  { %v1625_v39 = vpop.eup %1624  ;;  %v938_v40 = vmul.f32 %v1623_v36, %v936_v35  ;;  %v1217_v35 = vld [vmem:[%s2074_s4 + $0x30] sm:$0xff]  ;;  %v1218_v36 = vld [vmem:[%s2074_s4 + $0x38] sm:$0xff] }
 0x8da   :  { %v939_v42 = vmul.f32 %v1625_v39, %v1621_v31  ;;  %v1522_v31 = vpack.c.bf16 %v1216_v30, %v1215_v28  ;;  %v1525_v39 = vpack.c.bf16 %v1218_v36, %v1217_v35 }
 0x8dc   :  { %v940_v43 = vadd.f32 %v939_v42, %v938_v40 }
 0x8de   :  { %1628 = vtanh.f32 %v940_v43  ;;  %v1070_v11 = vrot.slane %v940_v43, 6 }
 0x8e1   :  { %v1627_v44 = vpop.eup %1626 }
 0x8e8   :  { %v1629_v45 = vpop.eup %1628 }
 0x8e9   :  { %v942_v46 = vmul.f32 %v1629_v45, %v1627_v44 }
 0x8eb   :  { %v944_v48 = vrot.slane %v942_v46, 2 }
 0x8ed   :  { %1341 = vmatmul.mubr.msk.f32.vlgmr.msra.gmra.mrb[6].mxu1 %vm149_vm1, %v944_v48 }
 0x8ee   :  { %1376 = vmatprep.mubr.msk.f32.mxu1 %vm1691_vm2, %v1686_v7 }
 0x9c0   :  { %v1013_v49 = vpop.f32.mrb[6].mxu1 }
 0x9c1   :  { %v1020_v51 = vrot.slane %v1013_v49, 4  ;;  %v1015_v55 = vpop.f32.mrb[7].mxu1 }
 0x9c2   :  { %v1021_v56 = vrot.slane %v1015_v55, 4 }
 0x9c3   :  { %v1024_v57 = vadd.f32 %v1020_v51, %v1861_v50 }
 0x9c4   :  { %v1025_v58 = vadd.f32 %v1021_v56, %v678_v37 }
 0x9c5   :  { %1038 = vrot.lane.b32.xlu1 %v1024_v57, %s1689_s25 }
 0x9c6   :  { %1027 = vrot.lane.b32.xlu0 %v1025_v58, %s1688_s24 }
 0x9c9   :  { %1051 = vrot.lane.b32.xlu1 %v1025_v58, %s1689_s25 }
 0x9ca   :  { %1048 = vrot.lane.b32.xlu0 %v1024_v57, %s1687_s2 }
 0x9cd   :  { %1059 = vrot.lane.b32.xlu1 %v1025_v58, %s1687_s2 }
 0x9ce   :  { %1056 = vrot.lane.b32.xlu0 %v1024_v57, %s1688_s24 }
 0xa37   :  { %v1039_v59 = vpop.permute.xlu1 %1038 }
 0xa38   :  { %v1041_v60 = vsel %vm46_vm0, %v1039_v59, %v1025_v58  ;;  %v1028_v61 = vpop.permute.xlu0 %1027 }
 0xa39   :  { %v1343_v62 = vmul.f32 -1.442695, %v1041_v60  ;;  %v1030_v63 = vsel %vm46_vm0, %v1024_v57, %v1028_v61 }
 0xa3a   :  { %v1342_v37 = vmul.f32 -1.442695, %v1030_v63 }
 0xa3b   :  { %1630 = vpow2.f32 %v1343_v62  ;;  %v1052_v0 = vpop.permute.xlu1 %1051 }
 0xa3c   :  { %1632 = vpow2.f32 %v1342_v37  ;;  %v1049_v1 = vpop.permute.xlu0 %1048 }
 0xa3d   :  { %v1054_v52 = vsel %vm46_vm0, %v1049_v1, %v1052_v0 }
 0xa3f   :  { %v1060_v8 = vpop.permute.xlu1 %1059 }
 0xa40   :  { %v1057_v2 = vpop.permute.xlu0 %1056 }
 0xa41   :  { %v1062_v3 = vsel %vm46_vm0, %v1057_v2, %v1060_v8 }
 0xa42   :  { %v1344_v53 = vmul.f32 -1.442695, %v1062_v3 }
 0xa44   :  { %1634 = vpow2.f32 %v1344_v53 }
 0xa45   :  { %v1631_v32 = vpop.eup %1630  ;;  %1636 = vtanh.f32 %v1054_v52 }
 0xa46   :  { %v1633_v4 = vpop.eup %1632  ;;  %v1045_v5 = vadd.f32 1.0, %v1631_v32 }
 0xa47   :  { %v1034_v6 = vadd.f32 1.0, %v1633_v4 }
 0xa48   :  { %1638 = vrcp.f32 %v1045_v5  ;;  %v1349_v5 = vld [vmem:[%s2075_s5] ss:$0 sm:$0xff] }
 0xa49   :  { %1640 = vrcp.f32 %v1034_v6 }
 0xa4e   :  { %v1635_v9 = vpop.eup %1634 }
 0xa4f   :  { %v1637_v10 = vpop.eup %1636  ;;  %v1066_v18 = vadd.f32 1.0, %v1635_v9 }
 0xa51   :  { %1642 = vrcp.f32 %v1066_v18 }
 0xa52   :  { %v1639_v12 = vpop.eup %1638 }
 0xa53   :  { %v1641_v13 = vpop.eup %1640  ;;  %v1072_v15 = vmul.f32 %v1639_v12, %v1070_v11 }
 0xa54   :  { %v1073_v25 = vmul.f32 %v1641_v13, %v1637_v10 }
 0xa56   :  { %v2011_v29 = vadd.f32 %v1073_v25, %v1072_v15 }
 0xa58   :  { %1644 = vtanh.f32 %v2011_v29  ;;  %v1204_v63 = vrot.slane %v2011_v29, 6 }
 0xa5b   :  { %v1643_v33 = vpop.eup %1642 }
 0xa62   :  { %v1645_v34 = vpop.eup %1644 }
 0xa63   :  { %v1076_v38 = vmul.f32 %v1645_v34, %v1643_v33 }
 0xa65   :  { %v1078_v16 = vrot.slane %v1076_v38, 4 }
 0xa67   :  { %1345 = vmatmul.mubr.msk.f32.vlgmr.msra.gmra.mrb[10].mxu0 %vm149_vm1, %v1078_v16 }
 0xb3a   :  { %v1147_v17 = vpop.f32.mrb[10].mxu0 }
 0xb3b   :  { %v1154_v19 = vrot.slane %v1147_v17, 2  ;;  %v1149_v20 = vpop.f32.mrb[11].mxu0 }
 0xb3c   :  { %v1155_v21 = vrot.slane %v1149_v20, 2 }
 0xb3d   :  { %v1158_v22 = vadd.f32 %v1154_v19, %v1861_v50  ;;  %v1516_v50 = vpack.c.bf16 %v1212_v47, %v1211_v24 }
 0xb3e   :  { %v1159_v23 = vadd.f32 %v1155_v21, %v808_v14  ;;  %v1690_v14 = vmov 0.0|0.0  }
 0xb3f   :  { %1172 = vrot.lane.b32.xlu1 %v1158_v22, %s1689_s25  ;;  %1515 = vmatprep.subr.bf16.mxu1 %v1690_v14 }
 0xb40   :  { %1161 = vrot.lane.b32.xlu0 %v1159_v23, %s1688_s24  ;;  %1517 = vmatpush3.bf16.msra.mxu1 %v1516_v50 }
 0xb41   :  { %1518 = vmatprep.subr.bf16.mxu1 %v1690_v14 }
 0xb43   :  { %1185 = vrot.lane.b32.xlu1 %v1159_v23, %s1689_s25 }
 0xb44   :  { %1182 = vrot.lane.b32.xlu0 %v1158_v22, %s1687_s2  ;;  %1520 = vmatpush3.bf16.msra.mxu1 %v1519_v27 }
 0xb45   :  { %1521 = vmatprep.subr.bf16.mxu1 %v1690_v14 }
 0xb47   :  { %1193 = vrot.lane.b32.xlu1 %v1159_v23, %s1687_s2 }
 0xb48   :  { %1190 = vrot.lane.b32.xlu0 %v1158_v22, %s1688_s24  ;;  %1523 = vmatpush3.bf16.msra.mxu1 %v1522_v31 }
 0xb49   :  { %1524 = vmatprep.subr.bf16.mxu1 %v1690_v14 }
 0xb4c   :  { %1526 = vmatpush3.bf16.msra.mxu1 %v1525_v39 }
 0xbb1   :  { %v1173_v40 = vpop.permute.xlu1 %1172 }
 0xbb2   :  { %v1175_v41 = vsel %vm46_vm0, %v1173_v40, %v1159_v23  ;;  %v1162_v42 = vpop.permute.xlu0 %1161 }
 0xbb3   :  { %v1347_v7 = vmul.f32 -1.442695, %v1175_v41  ;;  %v1164_v43 = vsel %vm46_vm0, %v1158_v22, %v1162_v42 }
 0xbb4   :  { %v1346_v44 = vmul.f32 -1.442695, %v1164_v43 }
 0xbb5   :  { %1646 = vpow2.f32 %v1347_v7  ;;  %v1186_v45 = vpop.permute.xlu1 %1185 }
 0xbb6   :  { %1648 = vpow2.f32 %v1346_v44  ;;  %v1183_v46 = vpop.permute.xlu0 %1182 }
 0xbb7   :  { %v1188_v56 = vsel %vm46_vm0, %v1183_v46, %v1186_v45 }
 0xbb9   :  { %v1194_v48 = vpop.permute.xlu1 %1193 }
 0xbba   :  { %v1191_v49 = vpop.permute.xlu0 %1190 }
 0xbbb   :  { %v1196_v51 = vsel %vm46_vm0, %v1191_v49, %v1194_v48 }
 0xbbc   :  { %v1348_v55 = vmul.f32 -1.442695, %v1196_v51 }
 0xbbe   :  { %1650 = vpow2.f32 %v1348_v55 }
 0xbbf   :  { %v1647_v57 = vpop.eup %1646  ;;  %1652 = vtanh.f32 %v1188_v56 }
 0xbc0   :  { %v1649_v58 = vpop.eup %1648  ;;  %v1179_v59 = vadd.f32 1.0, %v1647_v57 }
 0xbc1   :  { %v1168_v60 = vadd.f32 1.0, %v1649_v58 }
 0xbc2   :  { %1654 = vrcp.f32 %v1179_v59 }
 0xbc3   :  { %1656 = vrcp.f32 %v1168_v60 }
 0xbc8   :  { %v1651_v61 = vpop.eup %1650 }
 0xbc9   :  { %v1653_v62 = vpop.eup %1652  ;;  %v1200_v8 = vadd.f32 1.0, %v1651_v61 }
 0xbcb   :  { %1658 = vrcp.f32 %v1200_v8 }
 0xbcc   :  { %v1655_v37 = vpop.eup %1654 }
 0xbcd   :  { %v1657_v0 = vpop.eup %1656  ;;  %v1206_v1 = vmul.f32 %v1655_v37, %v1204_v63 }
 0xbce   :  { %v1207_v2 = vmul.f32 %v1657_v0, %v1653_v62 }
 0xbd0   :  { %v1208_v3 = vadd.f32 %v1207_v2, %v1206_v1 }
 0xbd2   :  { %1660 = vtanh.f32 %v1208_v3 }
 0xbd5   :  { %v1659_v53 = vpop.eup %1658 }
 0xbdc   :  { %v1661_v52 = vpop.eup %1660 }
 0xbdd   :  { %v1210_v32 = vmul.f32 %v1661_v52, %v1659_v53 }
 0xbdf   :  { %v1227_v4 = vrot.slane %v1210_v32, 6 }
 0xbe1   :  { %1377 = vmatmul.mubr.msk.f32.vlgmr.msra.gmra.mrb[8].mxu1 %vm149_vm1, %v1227_v4 }
 0xcb4   :  { %v1296_v6 = vpop.f32.mrb[8].mxu1 }
 0xcb5   :  { %v1297_v9 = vadd.f32 %v1349_v5, %v1296_v6  ;;  %v1378_v10 = vpop.f32.mrb[9].mxu1 }
 0xcb7   :  { %1301 = vst.msk [vmem:[#allocation2] sm:$0x3] %vm1300_vm3, %v1297_v9 }
 0xcb8   :  { %1673 = shalt.err (!%p1670_p4)
}
 0xcb9   :  { %s1674_s23 = scalar_lea.hbm %s2076_s6, 32 }
 0xcba   :  { %p1675_p5 = scmp.ne.s32.totalorder %s2076_s6, %s1674_s23  ;;  %p1678_p6 = scmp.lt.u32.totalorder %s1674_s23, %s2076_s6 }
 0xcbc   :  { %p1680_p7 = pnand %p1678_p6, %p1675_p5 }
 0xcbe   :  { %1683 = shalt.err (!%p1680_p7)
}
 0xcbf   :  { %1311 = dma.vmem_to_hbm [thread:$0]  %s1309_s19, 32, %s2076_s6, [#allocation3]  }
 0xcc0   :  { %1684 = dma.done.wait [#allocation3], 32  }
 0xcc1   :  { %1685 = vsyncadd [#allocation3], 4294967264 }
 0xcc2   :  { %1315 = vsyncpa [#allocation3], 1 }

</bundles_post_ra>
